<compile_context>
chip_gen: v5e
topology: v5e:2x2
jax: 0.10.0
libtpu: 0.0.40
codegen_flags: <defaults>
</compile_context>

<pallas_src>
import jax
import jax.numpy as jnp
from jax.experimental import pallas as pl
from jax.experimental.pallas import tpu as pltpu

# ---------------- scaled-down roberta-base config ----------------
HIDDEN = 128          # roberta-base: 768
N_HEADS = 4           # roberta-base: 12
HEAD_DIM = HIDDEN // N_HEADS
FFN = 256             # roberta-base: 3072
N_LAYERS = 2          # roberta-base: 12
VOCAB = 1000
MAX_POS = 64
PAD_IDX = 1           # roberta padding_idx
NUM_LABELS = 4
HEAD_PAD = 128        # classifier output padded to a full lane group
LN_EPS = 1e-5
DTYPE = jnp.float32
W_DTYPE = jnp.bfloat16  # matmul weight storage dtype (f32 accumulation)


# ------------------------ in-kernel helpers -----------------------
def _layernorm(x, g, b):
    # f32 LayerNorm over the last (hidden) axis.
    mu = jnp.mean(x, axis=-1, keepdims=True)
    c = x - mu
    var = jnp.mean(c * c, axis=-1, keepdims=True)
    return c * jax.lax.rsqrt(var + LN_EPS) * g + b


def _matmul_bias(x, w_ref, b_ref):
    # bf16 x bf16 MXU matmul, f32 accumulation, f32 bias add.
    y = jnp.dot(x.astype(W_DTYPE), w_ref[...], preferred_element_type=jnp.float32)
    return y + b_ref[...]


# -------------------- fused encoder-layer kernel -------------------
def _encoder_layer_kernel(h_ref, bias_ref,
                          wqkv_ref, bqkv_ref, wo_ref, bo_ref,
                          ln1_g_ref, ln1_b_ref,
                          w1_ref, b1_ref, w2_ref, b2_ref,
                          ln2_g_ref, ln2_b_ref,
                          o_ref):
    h = h_ref[0]            # (S, HIDDEN) f32 — one batch element per grid step
    bias = bias_ref[0]      # (1, S) f32 additive key-mask, broadcast over rows
    seq = h.shape[0]

    # ---- fused QKV projection: one (S,H) x (H,3H) MXU push ----
    qkv = _matmul_bias(h, wqkv_ref, bqkv_ref)        # (S, 3*HIDDEN) f32

    # ---- multi-head attention; heads are contiguous 32-lane slices ----
    scale = 1.0 / (HEAD_DIM ** 0.5)
    attn = jnp.zeros((seq, HIDDEN), jnp.float32)
    for hd in range(N_HEADS):
        lo = hd * HEAD_DIM
        q = qkv[:, lo:lo + HEAD_DIM]
        k = qkv[:, HIDDEN + lo:HIDDEN + lo + HEAD_DIM]
        v = qkv[:, 2 * HIDDEN + lo:2 * HIDDEN + lo + HEAD_DIM]
        # q @ k^T without an explicit transpose (contract the last axes).
        s = jax.lax.dot_general(q, k, (((1,), (1,)), ((), ())),
                                preferred_element_type=jnp.float32)
        s = s * scale + bias
        s = s - jnp.max(s, axis=-1, keepdims=True)
        p = jnp.exp(s)
        p = p * pl.reciprocal(jnp.sum(p, axis=-1, keepdims=True), approx=True)
        ctx = jnp.dot(p, v, preferred_element_type=jnp.float32)  # (S, HEAD_DIM)
        # Head merge folded into the output projection: per-head row block of
        # W_O, accumulated (no lane concatenation / relayout).
        attn = attn + jnp.dot(ctx.astype(W_DTYPE),
                              wo_ref[lo:lo + HEAD_DIM, :],
                              preferred_element_type=jnp.float32)
    attn = attn + bo_ref[...]

    # ---- residual + LN, feed-forward, residual + LN (all f32 epilogue) ----
    h1 = _layernorm(attn + h, ln1_g_ref[...], ln1_b_ref[...])
    # TODO(synk): HF RoBERTa uses exact erf GELU; tanh approximation used here.
    ff = jax.nn.gelu(_matmul_bias(h1, w1_ref, b1_ref), approximate=True)
    ff = _matmul_bias(ff, w2_ref, b2_ref)
    h2 = _layernorm(ff + h1, ln2_g_ref[...], ln2_b_ref[...])

    o_ref[0] = h2.astype(o_ref.dtype)


def encoder_layer(h, bias, layer):
    B, S, H = h.shape

    def full_spec(arr):
        n = arr.ndim
        return pl.BlockSpec(arr.shape, lambda b, _n=n: (0,) * _n)

    weights = [layer["wqkv"], layer["bqkv"], layer["wo"], layer["bo"],
               layer["ln1_g"], layer["ln1_b"],
               layer["w1"], layer["b1"], layer["w2"], layer["b2"],
               layer["ln2_g"], layer["ln2_b"]]

    return pl.pallas_call(
        _encoder_layer_kernel,
        out_shape=jax.ShapeDtypeStruct((B, S, H), h.dtype),
        grid=(B,),
        in_specs=[pl.BlockSpec((1, S, H), lambda b: (b, 0, 0)),
                  pl.BlockSpec((1, 1, S), lambda b: (b, 0, 0))]
                 + [full_spec(w) for w in weights],
        out_specs=pl.BlockSpec((1, S, H), lambda b: (b, 0, 0)),
        compiler_params=pltpu.CompilerParams(
            dimension_semantics=("parallel",)),
    )(h, bias, *weights)


# ----------------------- embedding LayerNorm ----------------------
def _emb_ln_kernel(x_ref, g_ref, b_ref, o_ref):
    x = x_ref[0]
    o_ref[0] = _layernorm(x, g_ref[...], b_ref[...]).astype(o_ref.dtype)


def embedding_layernorm(x, gamma, beta):
    B, S, H = x.shape
    return pl.pallas_call(
        _emb_ln_kernel,
        out_shape=jax.ShapeDtypeStruct((B, S, H), x.dtype),
        grid=(B,),
        in_specs=[pl.BlockSpec((1, S, H), lambda b: (b, 0, 0)),
                  pl.BlockSpec((1, H), lambda b: (0, 0)),
                  pl.BlockSpec((1, H), lambda b: (0, 0))],
        out_specs=pl.BlockSpec((1, S, H), lambda b: (b, 0, 0)),
        compiler_params=pltpu.CompilerParams(
            dimension_semantics=("parallel",)),
    )(x, gamma, beta)


# --------------------- classifier head (padded) --------------------
def _cls_head_kernel(x_ref, w_ref, b_ref, o_ref):
    y = jnp.dot(x_ref[...].astype(W_DTYPE), w_ref[...],
                preferred_element_type=jnp.float32) + b_ref[...]
    o_ref[...] = y.astype(o_ref.dtype)


def classifier_head(x, w, b):
    M, K = x.shape
    N = w.shape[1]
    return pl.pallas_call(
        _cls_head_kernel,
        out_shape=jax.ShapeDtypeStruct((M, N), x.dtype),
        grid=(1,),
        in_specs=[pl.BlockSpec((M, K), lambda i: (0, 0)),
                  pl.BlockSpec((K, N), lambda i: (0, 0)),
                  pl.BlockSpec((1, N), lambda i: (0, 0))],
        out_specs=pl.BlockSpec((M, N), lambda i: (0, 0)),
    )(x, w, b)


# ------------------------ parameter init -------------------------
def init_params(key):
    def dense(key, fan_in, fan_out, w_dtype=W_DTYPE):
        kw, key = jax.random.split(key)
        w = (jax.random.normal(kw, (fan_in, fan_out), jnp.float32) * 0.02).astype(w_dtype)
        b = jnp.zeros((1, fan_out), DTYPE)
        return w, b, key

    params = {}
    k_we, k_pe, k_te, key = jax.random.split(key, 4)
    params["word_emb"] = jax.random.normal(k_we, (VOCAB, HIDDEN), DTYPE) * 0.02
    params["pos_emb"] = jax.random.normal(k_pe, (MAX_POS, HIDDEN), DTYPE) * 0.02
    params["type_emb"] = jax.random.normal(k_te, (2, HIDDEN), DTYPE) * 0.02
    params["emb_ln_g"] = jnp.ones((1, HIDDEN), DTYPE)
    params["emb_ln_b"] = jnp.zeros((1, HIDDEN), DTYPE)

    layers = []
    for _ in range(N_LAYERS):
        layer = {}
        # fused Q/K/V projection weight
        layer["wqkv"], layer["bqkv"], key = dense(key, HIDDEN, 3 * HIDDEN)
        layer["wo"], layer["bo"], key = dense(key, HIDDEN, HIDDEN)
        layer["ln1_g"] = jnp.ones((1, HIDDEN), DTYPE)
        layer["ln1_b"] = jnp.zeros((1, HIDDEN), DTYPE)
        layer["w1"], layer["b1"], key = dense(key, HIDDEN, FFN)
        layer["w2"], layer["b2"], key = dense(key, FFN, HIDDEN)
        layer["ln2_g"] = jnp.ones((1, HIDDEN), DTYPE)
        layer["ln2_b"] = jnp.zeros((1, HIDDEN), DTYPE)
        layers.append(layer)
    params["layers"] = layers

    cw, cb, key = dense(key, HIDDEN, NUM_LABELS)
    # Pad the classifier to 128 output lanes (lane-dense stores); slice outside.
    params["cls_w"] = jnp.zeros((HIDDEN, HEAD_PAD), W_DTYPE).at[:, :NUM_LABELS].set(cw)
    params["cls_b"] = jnp.zeros((1, HEAD_PAD), DTYPE).at[:, :NUM_LABELS].set(cb)
    return params


# --------------------------- forward ------------------------------
def roberta_classifier_forward(params, input_ids, attention_mask):
    B, S = input_ids.shape

    # RoBERTa position ids: cumsum over non-pad tokens, offset by padding_idx.
    not_pad = (input_ids != PAD_IDX).astype(jnp.int32)
    pos_ids = jnp.cumsum(not_pad, axis=1) * not_pad + PAD_IDX

    # Embedding gathers stay in plain JAX (data-dependent gather), then a
    # dedicated LayerNorm kernel (no fake zeros residual).
    emb = (params["word_emb"][input_ids]
           + params["pos_emb"][pos_ids]
           + params["type_emb"][jnp.zeros_like(input_ids)])       # (B, S, H)
    h = embedding_layernorm(emb, params["emb_ln_g"], params["emb_ln_b"])

    # Tiny (B, 1, S) additive mask bias; broadcast to (S, S) inside the kernel.
    bias = ((1.0 - attention_mask.astype(DTYPE)) * -1e9).reshape(B, 1, S)

    for layer in params["layers"]:
        h = encoder_layer(h, bias, layer)

    # last_hidden_state_cls = outputs[0][:, 0, :]
    cls = h[:, 0, :]                                              # (B, HIDDEN)
    # classifier = nn.Linear(D_in, num_labels), lane-padded then sliced.
    logits = classifier_head(cls, params["cls_w"], params["cls_b"])
    return logits[:, :NUM_LABELS]


# ----------------------------- main --------------------------------
if __name__ == "__main__":
    key = jax.random.PRNGKey(0)
    k_params, k_ids = jax.random.split(key)

    B, S = 2, 8
    params = init_params(k_params)
    input_ids = jax.random.randint(k_ids, (B, S), 2, VOCAB, dtype=jnp.int32)
    attention_mask = jnp.ones((B, S), dtype=jnp.int32)

    forward = jax.jit(roberta_classifier_forward)
    logits = forward(params, input_ids, attention_mask)
    jax.block_until_ready(logits)
    assert logits.shape == (B, NUM_LABELS)
    print("KERNEL_OK")
</pallas_src>

<mosaic_0001>
module attributes {stable_mosaic.version = 11 : i64} {
  func.func @_emb_ln_kernel(%arg0: i32, %arg1: memref<1x8x128xf32, #tpu.memory_space<vmem>>, %arg2: memref<1x128xf32, #tpu.memory_space<vmem>>, %arg3: memref<1x128xf32, #tpu.memory_space<vmem>>, %arg4: memref<1x8x128xf32, #tpu.memory_space<vmem>>) attributes {dimension_semantics = [#tpu.dimension_semantics<parallel>], iteration_bounds = array<i64: 2>, scalar_prefetch = 0 : i64, scratch_operands = 0 : i64, tpu.core_type = #tpu.core_type<tc>, window_params = [{transform_indices = @transform_0, window_bounds = array<i64: 1, 8, 128>}, {pipeline_mode = #tpu.pipeline_mode<synchronous>, transform_indices = @transform_1, window_bounds = array<i64: 1, 128>}, {pipeline_mode = #tpu.pipeline_mode<synchronous>, transform_indices = @transform_2, window_bounds = array<i64: 1, 128>}, {transform_indices = @transform_3, window_bounds = array<i64: 1, 8, 128>}]} {
    %c0 = arith.constant 0 : index
    %c0_0 = arith.constant 0 : index
    %c0_1 = arith.constant 0 : index
    %0 = vector.load %arg1[%c0, %c0_0, %c0_1] : memref<1x8x128xf32, #tpu.memory_space<vmem>>, vector<1x8x128xf32>
    %1 = vector.shape_cast %0 : vector<1x8x128xf32> to vector<8x128xf32>
    %c0_2 = arith.constant 0 : index
    %c0_3 = arith.constant 0 : index
    %2 = vector.load %arg2[%c0_2, %c0_3] : memref<1x128xf32, #tpu.memory_space<vmem>>, vector<1x128xf32>
    %c0_4 = arith.constant 0 : index
    %c0_5 = arith.constant 0 : index
    %3 = vector.load %arg3[%c0_4, %c0_5] : memref<1x128xf32, #tpu.memory_space<vmem>>, vector<1x128xf32>
    %cst = arith.constant dense<0.000000e+00> : vector<8xf32>
    %4 = vector.multi_reduction <add>, %1, %cst [1] : vector<8x128xf32> to vector<8xf32>
    %5 = vector.shape_cast %4 : vector<8xf32> to vector<8x1xf32>
    %cst_6 = arith.constant 1.280000e+02 : f32
    %6 = vector.broadcast %cst_6 : f32 to vector<8x1xf32>
    %7 = arith.divf %5, %6 : vector<8x1xf32>
    %8 = vector.broadcast %7 : vector<8x1xf32> to vector<8x128xf32>
    %9 = arith.subf %1, %8 : vector<8x128xf32>
    %10 = arith.mulf %9, %9 : vector<8x128xf32>
    %cst_7 = arith.constant dense<0.000000e+00> : vector<8xf32>
    %11 = vector.multi_reduction <add>, %10, %cst_7 [1] : vector<8x128xf32> to vector<8xf32>
    %12 = vector.shape_cast %11 : vector<8xf32> to vector<8x1xf32>
    %cst_8 = arith.constant 1.280000e+02 : f32
    %13 = vector.broadcast %cst_8 : f32 to vector<8x1xf32>
    %14 = arith.divf %12, %13 : vector<8x1xf32>
    %cst_9 = arith.constant 9.99999974E-6 : f32
    %15 = vector.broadcast %cst_9 : f32 to vector<8x1xf32>
    %16 = arith.addf %14, %15 : vector<8x1xf32>
    %17 = math.rsqrt %16 : vector<8x1xf32>
    %18 = vector.broadcast %17 : vector<8x1xf32> to vector<8x128xf32>
    %19 = arith.mulf %9, %18 : vector<8x128xf32>
    %20 = vector.broadcast %2 : vector<1x128xf32> to vector<8x128xf32>
    %21 = arith.mulf %19, %20 : vector<8x128xf32>
    %22 = vector.broadcast %3 : vector<1x128xf32> to vector<8x128xf32>
    %23 = arith.addf %21, %22 : vector<8x128xf32>
    %c0_10 = arith.constant 0 : index
    %c0_11 = arith.constant 0 : index
    %c0_12 = arith.constant 0 : index
    %24 = vector.load %arg4[%c0_10, %c0_11, %c0_12] : memref<1x8x128xf32, #tpu.memory_space<vmem>>, vector<1x8x128xf32>
    %25 = vector.shape_cast %24 : vector<1x8x128xf32> to vector<8x128xf32>
    %26 = vector.shape_cast %23 : vector<8x128xf32> to vector<1x8x128xf32>
    tpu.vector_store %arg4[%c0_10, %c0_11, %c0_12], %26 {strides = array<i32>} : memref<1x8x128xf32, #tpu.memory_space<vmem>>, vector<1x8x128xf32>,
    return
  }
  func.func @transform_0(%arg0: i32) -> (i32, i32, i32) {
    %c0_i32 = arith.constant 0 : i32
    %c0_i32_0 = arith.constant 0 : i32
    %c0_i32_1 = arith.constant 0 : i32
    return %arg0, %c0_i32, %c0_i32_0 : i32, i32, i32
  }
  func.func @transform_1(%arg0: i32) -> (i32, i32) {
    %c0_i32 = arith.constant 0 : i32
    %c0_i32_0 = arith.constant 0 : i32
    %c0_i32_1 = arith.constant 0 : i32
    return %c0_i32, %c0_i32_0 : i32, i32
  }
  func.func @transform_2(%arg0: i32) -> (i32, i32) {
    %c0_i32 = arith.constant 0 : i32
    %c0_i32_0 = arith.constant 0 : i32
    %c0_i32_1 = arith.constant 0 : i32
    return %c0_i32, %c0_i32_0 : i32, i32
  }
  func.func @transform_3(%arg0: i32) -> (i32, i32, i32) {
    %c0_i32 = arith.constant 0 : i32
    %c0_i32_0 = arith.constant 0 : i32
    %c0_i32_1 = arith.constant 0 : i32
    return %arg0, %c0_i32, %c0_i32_0 : i32, i32, i32
  }
}

module attributes {stable_mosaic.version = 11 : i64} {
  func.func @_cls_head_kernel(%arg0: i32, %arg1: memref<2x128xf32, #tpu.memory_space<vmem>>, %arg2: memref<128x128xbf16, #tpu.memory_space<vmem>>, %arg3: memref<1x128xf32, #tpu.memory_space<vmem>>, %arg4: memref<2x128xf32, #tpu.memory_space<vmem>>) attributes {dimension_semantics = [#tpu.dimension_semantics<arbitrary>], iteration_bounds = array<i64: 1>, scalar_prefetch = 0 : i64, scratch_operands = 0 : i64, tpu.core_type = #tpu.core_type<tc>, window_params = [{pipeline_mode = #tpu.pipeline_mode<synchronous>, transform_indices = @transform_0, window_bounds = array<i64: 2, 128>}, {pipeline_mode = #tpu.pipeline_mode<synchronous>, transform_indices = @transform_1, window_bounds = array<i64: 128, 128>}, {pipeline_mode = #tpu.pipeline_mode<synchronous>, transform_indices = @transform_2, window_bounds = array<i64: 1, 128>}, {pipeline_mode = #tpu.pipeline_mode<synchronous>, transform_indices = @transform_3, window_bounds = array<i64: 2, 128>}]} {
    %c0 = arith.constant 0 : index
    %c0_0 = arith.constant 0 : index
    %0 = vector.load %arg1[%c0, %c0_0] : memref<2x128xf32, #tpu.memory_space<vmem>>, vector<2x128xf32>
    %1 = arith.truncf %0 : vector<2x128xf32> to vector<2x128xbf16>
    %c0_1 = arith.constant 0 : index
    %c0_2 = arith.constant 0 : index
    %2 = vector.load %arg2[%c0_1, %c0_2] : memref<128x128xbf16, #tpu.memory_space<vmem>>, vector<128x128xbf16>
    %cst = arith.constant dense<0.000000e+00> : vector<2x128xf32>
    %3 = tpu.matmul %1, %2, %cst {dimension_numbers = #tpu.dot_dimension_numbers<[1], [0], [0], [1], [0, 0, 1, 1], [], []>} : vector<2x128xbf16>, vector<128x128xbf16>, vector<2x128xf32> -> vector<2x128xf32>
    %c0_3 = arith.constant 0 : index
    %c0_4 = arith.constant 0 : index
    %4 = vector.load %arg3[%c0_3, %c0_4] : memref<1x128xf32, #tpu.memory_space<vmem>>, vector<1x128xf32>
    %5 = vector.broadcast %4 : vector<1x128xf32> to vector<2x128xf32>
    %6 = arith.addf %3, %5 : vector<2x128xf32>
    %c0_5 = arith.constant 0 : index
    %c0_6 = arith.constant 0 : index
    %7 = vector.load %arg4[%c0_5, %c0_6] : memref<2x128xf32, #tpu.memory_space<vmem>>, vector<2x128xf32>
    tpu.vector_store %arg4[%c0_5, %c0_6], %6 {strides = array<i32>} : memref<2x128xf32, #tpu.memory_space<vmem>>, vector<2x128xf32>,
    return
  }
  func.func @transform_0(%arg0: i32) -> (i32, i32) {
    %c0_i32 = arith.constant 0 : i32
    %c0_i32_0 = arith.constant 0 : i32
    %c0_i32_1 = arith.constant 0 : i32
    return %c0_i32, %c0_i32_0 : i32, i32
  }
  func.func @transform_1(%arg0: i32) -> (i32, i32) {
    %c0_i32 = arith.constant 0 : i32
    %c0_i32_0 = arith.constant 0 : i32
    %c0_i32_1 = arith.constant 0 : i32
    return %c0_i32, %c0_i32_0 : i32, i32
  }
  func.func @transform_2(%arg0: i32) -> (i32, i32) {
    %c0_i32 = arith.constant 0 : i32
    %c0_i32_0 = arith.constant 0 : i32
    %c0_i32_1 = arith.constant 0 : i32
    return %c0_i32, %c0_i32_0 : i32, i32
  }
  func.func @transform_3(%arg0: i32) -> (i32, i32) {
    %c0_i32 = arith.constant 0 : i32
    %c0_i32_0 = arith.constant 0 : i32
    %c0_i32_1 = arith.constant 0 : i32
    return %c0_i32, %c0_i32_0 : i32, i32
  }
}

module attributes {stable_mosaic.version = 11 : i64} {
  func.func @_encoder_layer_kernel(%arg0: i32, %arg1: memref<1x8x128xf32, #tpu.memory_space<vmem>>, %arg2: memref<1x1x8xf32, #tpu.memory_space<vmem>>, %arg3: memref<128x384xbf16, #tpu.memory_space<vmem>>, %arg4: memref<1x384xf32, #tpu.memory_space<vmem>>, %arg5: memref<128x128xbf16, #tpu.memory_space<vmem>>, %arg6: memref<1x128xf32, #tpu.memory_space<vmem>>, %arg7: memref<1x128xf32, #tpu.memory_space<vmem>>, %arg8: memref<1x128xf32, #tpu.memory_space<vmem>>, %arg9: memref<128x256xbf16, #tpu.memory_space<vmem>>, %arg10: memref<1x256xf32, #tpu.memory_space<vmem>>, %arg11: memref<256x128xbf16, #tpu.memory_space<vmem>>, %arg12: memref<1x128xf32, #tpu.memory_space<vmem>>, %arg13: memref<1x128xf32, #tpu.memory_space<vmem>>, %arg14: memref<1x128xf32, #tpu.memory_space<vmem>>, %arg15: memref<1x8x128xf32, #tpu.memory_space<vmem>>) attributes {dimension_semantics = [#tpu.dimension_semantics<parallel>], iteration_bounds = array<i64: 2>, scalar_prefetch = 0 : i64, scratch_operands = 0 : i64, tpu.core_type = #tpu.core_type<tc>, window_params = [{transform_indices = @transform_0, window_bounds = array<i64: 1, 8, 128>}, {transform_indices = @transform_1, window_bounds = array<i64: 1, 1, 8>}, {pipeline_mode = #tpu.pipeline_mode<synchronous>, transform_indices = @transform_2, window_bounds = array<i64: 128, 384>}, {pipeline_mode = #tpu.pipeline_mode<synchronous>, transform_indices = @transform_3, window_bounds = array<i64: 1, 384>}, {pipeline_mode = #tpu.pipeline_mode<synchronous>, transform_indices = @transform_4, window_bounds = array<i64: 128, 128>}, {pipeline_mode = #tpu.pipeline_mode<synchronous>, transform_indices = @transform_5, window_bounds = array<i64: 1, 128>}, {pipeline_mode = #tpu.pipeline_mode<synchronous>, transform_indices = @transform_6, window_bounds = array<i64: 1, 128>}, {pipeline_mode = #tpu.pipeline_mode<synchronous>, transform_indices = @transform_7, window_bounds = array<i64: 1, 128>}, {pipeline_mode = #tpu.pipeline_mode<synchronous>, transform_indices = @transform_8, window_bounds = array<i64: 128, 256>}, {pipeline_mode = #tpu.pipeline_mode<synchronous>, transform_indices = @transform_9, window_bounds = array<i64: 1, 256>}, {pipeline_mode = #tpu.pipeline_mode<synchronous>, transform_indices = @transform_10, window_bounds = array<i64: 256, 128>}, {pipeline_mode = #tpu.pipeline_mode<synchronous>, transform_indices = @transform_11, window_bounds = array<i64: 1, 128>}, {pipeline_mode = #tpu.pipeline_mode<synchronous>, transform_indices = @transform_12, window_bounds = array<i64: 1, 128>}, {pipeline_mode = #tpu.pipeline_mode<synchronous>, transform_indices = @transform_13, window_bounds = array<i64: 1, 128>}, {transform_indices = @transform_14, window_bounds = array<i64: 1, 8, 128>}]} {
    %c0 = arith.constant 0 : index
    %c0_0 = arith.constant 0 : index
    %c0_1 = arith.constant 0 : index
    %0 = vector.load %arg1[%c0, %c0_0, %c0_1] : memref<1x8x128xf32, #tpu.memory_space<vmem>>, vector<1x8x128xf32>
    %1 = vector.shape_cast %0 : vector<1x8x128xf32> to vector<8x128xf32>
    %c0_2 = arith.constant 0 : index
    %c0_3 = arith.constant 0 : index
    %c0_4 = arith.constant 0 : index
    %2 = vector.load %arg2[%c0_2, %c0_3, %c0_4] : memref<1x1x8xf32, #tpu.memory_space<vmem>>, vector<1x1x8xf32>
    %3 = vector.shape_cast %2 : vector<1x1x8xf32> to vector<1x8xf32>
    %4 = arith.truncf %1 : vector<8x128xf32> to vector<8x128xbf16>
    %c0_5 = arith.constant 0 : index
    %c0_6 = arith.constant 0 : index
    %5 = vector.load %arg3[%c0_5, %c0_6] : memref<128x384xbf16, #tpu.memory_space<vmem>>, vector<128x384xbf16>
    %cst = arith.constant dense<0.000000e+00> : vector<8x384xf32>
    %6 = tpu.matmul %4, %5, %cst {dimension_numbers = #tpu.dot_dimension_numbers<[1], [0], [0], [1], [0, 0, 1, 1], [], []>} : vector<8x128xbf16>, vector<128x384xbf16>, vector<8x384xf32> -> vector<8x384xf32>
    %c0_7 = arith.constant 0 : index
    %c0_8 = arith.constant 0 : index
    %7 = vector.load %arg4[%c0_7, %c0_8] : memref<1x384xf32, #tpu.memory_space<vmem>>, vector<1x384xf32>
    %8 = vector.broadcast %7 : vector<1x384xf32> to vector<8x384xf32>
    %9 = arith.addf %6, %8 : vector<8x384xf32>
    %cst_9 = arith.constant 0.000000e+00 : f32
    %10 = vector.broadcast %cst_9 : f32 to vector<8x128xf32>
    %11 = vector.extract_strided_slice %9 {offsets = [0, 0], sizes = [8, 32], strides = [1, 1]} : vector<8x384xf32> to vector<8x32xf32>
    %12 = vector.extract_strided_slice %9 {offsets = [0, 128], sizes = [8, 32], strides = [1, 1]} : vector<8x384xf32> to vector<8x32xf32>
    %13 = vector.extract_strided_slice %9 {offsets = [0, 256], sizes = [8, 32], strides = [1, 1]} : vector<8x384xf32> to vector<8x32xf32>
    %cst_10 = arith.constant dense<0.000000e+00> : vector<8x8xf32>
    %14 = tpu.matmul %11, %12, %cst_10 {dimension_numbers = #tpu.dot_dimension_numbers<[1], [1], [0], [0], [0, 0, 1, 0], [], []>} : vector<8x32xf32>, vector<8x32xf32>, vector<8x8xf32> -> vector<8x8xf32>
    %cst_11 = arith.constant 0.176776692 : f32
    %15 = vector.broadcast %cst_11 : f32 to vector<8x8xf32>
    %16 = arith.mulf %14, %15 : vector<8x8xf32>
    %17 = vector.broadcast %3 : vector<1x8xf32> to vector<8x8xf32>
    %18 = arith.addf %16, %17 : vector<8x8xf32>
    %cst_12 = arith.constant dense<0xFF800000> : vector<8xf32>
    %19 = vector.multi_reduction <maximumf>, %18, %cst_12 [1] : vector<8x8xf32> to vector<8xf32>
    %20 = vector.shape_cast %19 : vector<8xf32> to vector<8x1xf32>
    %21 = vector.broadcast %20 : vector<8x1xf32> to vector<8x8xf32>
    %22 = arith.subf %18, %21 : vector<8x8xf32>
    %23 = math.exp %22 : vector<8x8xf32>
    %cst_13 = arith.constant dense<0.000000e+00> : vector<8xf32>
    %24 = vector.multi_reduction <add>, %23, %cst_13 [1] : vector<8x8xf32> to vector<8xf32>
    %25 = vector.shape_cast %24 : vector<8xf32> to vector<8x1xf32>
    %26 = tpu.reciprocal %25 {approx = true} : vector<8x1xf32> -> vector<8x1xf32>
    %27 = vector.broadcast %26 : vector<8x1xf32> to vector<8x8xf32>
    %28 = arith.mulf %23, %27 : vector<8x8xf32>
    %cst_14 = arith.constant dense<0.000000e+00> : vector<8x32xf32>
    %29 = tpu.matmul %28, %13, %cst_14 {dimension_numbers = #tpu.dot_dimension_numbers<[1], [0], [0], [1], [0, 0, 1, 1], [], []>} : vector<8x8xf32>, vector<8x32xf32>, vector<8x32xf32> -> vector<8x32xf32>
    %30 = arith.truncf %29 : vector<8x32xf32> to vector<8x32xbf16>
    %c0_15 = arith.constant 0 : index
    %c0_16 = arith.constant 0 : index
    %31 = vector.load %arg5[%c0_15, %c0_16] : memref<128x128xbf16, #tpu.memory_space<vmem>>, vector<32x128xbf16>
    %cst_17 = arith.constant dense<0.000000e+00> : vector<8x128xf32>
    %32 = tpu.matmul %30, %31, %cst_17 {dimension_numbers = #tpu.dot_dimension_numbers<[1], [0], [0], [1], [0, 0, 1, 1], [], []>} : vector<8x32xbf16>, vector<32x128xbf16>, vector<8x128xf32> -> vector<8x128xf32>
    %33 = arith.addf %10, %32 : vector<8x128xf32>
    %34 = vector.extract_strided_slice %9 {offsets = [0, 32], sizes = [8, 32], strides = [1, 1]} : vector<8x384xf32> to vector<8x32xf32>
    %35 = vector.extract_strided_slice %9 {offsets = [0, 160], sizes = [8, 32], strides = [1, 1]} : vector<8x384xf32> to vector<8x32xf32>
    %36 = vector.extract_strided_slice %9 {offsets = [0, 288], sizes = [8, 32], strides = [1, 1]} : vector<8x384xf32> to vector<8x32xf32>
    %cst_18 = arith.constant dense<0.000000e+00> : vector<8x8xf32>
    %37 = tpu.matmul %34, %35, %cst_18 {dimension_numbers = #tpu.dot_dimension_numbers<[1], [1], [0], [0], [0, 0, 1, 0], [], []>} : vector<8x32xf32>, vector<8x32xf32>, vector<8x8xf32> -> vector<8x8xf32>
    %cst_19 = arith.constant 0.176776692 : f32
    %38 = vector.broadcast %cst_19 : f32 to vector<8x8xf32>
    %39 = arith.mulf %37, %38 : vector<8x8xf32>
    %40 = vector.broadcast %3 : vector<1x8xf32> to vector<8x8xf32>
    %41 = arith.addf %39, %40 : vector<8x8xf32>
    %cst_20 = arith.constant dense<0xFF800000> : vector<8xf32>
    %42 = vector.multi_reduction <maximumf>, %41, %cst_20 [1] : vector<8x8xf32> to vector<8xf32>
    %43 = vector.shape_cast %42 : vector<8xf32> to vector<8x1xf32>
    %44 = vector.broadcast %43 : vector<8x1xf32> to vector<8x8xf32>
    %45 = arith.subf %41, %44 : vector<8x8xf32>
    %46 = math.exp %45 : vector<8x8xf32>
    %cst_21 = arith.constant dense<0.000000e+00> : vector<8xf32>
    %47 = vector.multi_reduction <add>, %46, %cst_21 [1] : vector<8x8xf32> to vector<8xf32>
    %48 = vector.shape_cast %47 : vector<8xf32> to vector<8x1xf32>
    %49 = tpu.reciprocal %48 {approx = true} : vector<8x1xf32> -> vector<8x1xf32>
    %50 = vector.broadcast %49 : vector<8x1xf32> to vector<8x8xf32>
    %51 = arith.mulf %46, %50 : vector<8x8xf32>
    %cst_22 = arith.constant dense<0.000000e+00> : vector<8x32xf32>
    %52 = tpu.matmul %51, %36, %cst_22 {dimension_numbers = #tpu.dot_dimension_numbers<[1], [0], [0], [1], [0, 0, 1, 1], [], []>} : vector<8x8xf32>, vector<8x32xf32>, vector<8x32xf32> -> vector<8x32xf32>
    %53 = arith.truncf %52 : vector<8x32xf32> to vector<8x32xbf16>
    %c32 = arith.constant 32 : index
    %c0_23 = arith.constant 0 : index
    %54 = vector.load %arg5[%c32, %c0_23] : memref<128x128xbf16, #tpu.memory_space<vmem>>, vector<32x128xbf16>
    %cst_24 = arith.constant dense<0.000000e+00> : vector<8x128xf32>
    %55 = tpu.matmul %53, %54, %cst_24 {dimension_numbers = #tpu.dot_dimension_numbers<[1], [0], [0], [1], [0, 0, 1, 1], [], []>} : vector<8x32xbf16>, vector<32x128xbf16>, vector<8x128xf32> -> vector<8x128xf32>
    %56 = arith.addf %33, %55 : vector<8x128xf32>
    %57 = vector.extract_strided_slice %9 {offsets = [0, 64], sizes = [8, 32], strides = [1, 1]} : vector<8x384xf32> to vector<8x32xf32>
    %58 = vector.extract_strided_slice %9 {offsets = [0, 192], sizes = [8, 32], strides = [1, 1]} : vector<8x384xf32> to vector<8x32xf32>
    %59 = vector.extract_strided_slice %9 {offsets = [0, 320], sizes = [8, 32], strides = [1, 1]} : vector<8x384xf32> to vector<8x32xf32>
    %cst_25 = arith.constant dense<0.000000e+00> : vector<8x8xf32>
    %60 = tpu.matmul %57, %58, %cst_25 {dimension_numbers = #tpu.dot_dimension_numbers<[1], [1], [0], [0], [0, 0, 1, 0], [], []>} : vector<8x32xf32>, vector<8x32xf32>, vector<8x8xf32> -> vector<8x8xf32>
    %cst_26 = arith.constant 0.176776692 : f32
    %61 = vector.broadcast %cst_26 : f32 to vector<8x8xf32>
    %62 = arith.mulf %60, %61 : vector<8x8xf32>
    %63 = vector.broadcast %3 : vector<1x8xf32> to vector<8x8xf32>
    %64 = arith.addf %62, %63 : vector<8x8xf32>
    %cst_27 = arith.constant dense<0xFF800000> : vector<8xf32>
    %65 = vector.multi_reduction <maximumf>, %64, %cst_27 [1] : vector<8x8xf32> to vector<8xf32>
    %66 = vector.shape_cast %65 : vector<8xf32> to vector<8x1xf32>
    %67 = vector.broadcast %66 : vector<8x1xf32> to vector<8x8xf32>
    %68 = arith.subf %64, %67 : vector<8x8xf32>
    %69 = math.exp %68 : vector<8x8xf32>
    %cst_28 = arith.constant dense<0.000000e+00> : vector<8xf32>
    %70 = vector.multi_reduction <add>, %69, %cst_28 [1] : vector<8x8xf32> to vector<8xf32>
    %71 = vector.shape_cast %70 : vector<8xf32> to vector<8x1xf32>
    %72 = tpu.reciprocal %71 {approx = true} : vector<8x1xf32> -> vector<8x1xf32>
    %73 = vector.broadcast %72 : vector<8x1xf32> to vector<8x8xf32>
    %74 = arith.mulf %69, %73 : vector<8x8xf32>
    %cst_29 = arith.constant dense<0.000000e+00> : vector<8x32xf32>
    %75 = tpu.matmul %74, %59, %cst_29 {dimension_numbers = #tpu.dot_dimension_numbers<[1], [0], [0], [1], [0, 0, 1, 1], [], []>} : vector<8x8xf32>, vector<8x32xf32>, vector<8x32xf32> -> vector<8x32xf32>
    %76 = arith.truncf %75 : vector<8x32xf32> to vector<8x32xbf16>
    %c64 = arith.constant 64 : index
    %c0_30 = arith.constant 0 : index
    %77 = vector.load %arg5[%c64, %c0_30] : memref<128x128xbf16, #tpu.memory_space<vmem>>, vector<32x128xbf16>
    %cst_31 = arith.constant dense<0.000000e+00> : vector<8x128xf32>
    %78 = tpu.matmul %76, %77, %cst_31 {dimension_numbers = #tpu.dot_dimension_numbers<[1], [0], [0], [1], [0, 0, 1, 1], [], []>} : vector<8x32xbf16>, vector<32x128xbf16>, vector<8x128xf32> -> vector<8x128xf32>
    %79 = arith.addf %56, %78 : vector<8x128xf32>
    %80 = vector.extract_strided_slice %9 {offsets = [0, 96], sizes = [8, 32], strides = [1, 1]} : vector<8x384xf32> to vector<8x32xf32>
    %81 = vector.extract_strided_slice %9 {offsets = [0, 224], sizes = [8, 32], strides = [1, 1]} : vector<8x384xf32> to vector<8x32xf32>
    %82 = vector.extract_strided_slice %9 {offsets = [0, 352], sizes = [8, 32], strides = [1, 1]} : vector<8x384xf32> to vector<8x32xf32>
    %cst_32 = arith.constant dense<0.000000e+00> : vector<8x8xf32>
    %83 = tpu.matmul %80, %81, %cst_32 {dimension_numbers = #tpu.dot_dimension_numbers<[1], [1], [0], [0], [0, 0, 1, 0], [], []>} : vector<8x32xf32>, vector<8x32xf32>, vector<8x8xf32> -> vector<8x8xf32>
    %cst_33 = arith.constant 0.176776692 : f32
    %84 = vector.broadcast %cst_33 : f32 to vector<8x8xf32>
    %85 = arith.mulf %83, %84 : vector<8x8xf32>
    %86 = vector.broadcast %3 : vector<1x8xf32> to vector<8x8xf32>
    %87 = arith.addf %85, %86 : vector<8x8xf32>
    %cst_34 = arith.constant dense<0xFF800000> : vector<8xf32>
    %88 = vector.multi_reduction <maximumf>, %87, %cst_34 [1] : vector<8x8xf32> to vector<8xf32>
    %89 = vector.shape_cast %88 : vector<8xf32> to vector<8x1xf32>
    %90 = vector.broadcast %89 : vector<8x1xf32> to vector<8x8xf32>
    %91 = arith.subf %87, %90 : vector<8x8xf32>
    %92 = math.exp %91 : vector<8x8xf32>
    %cst_35 = arith.constant dense<0.000000e+00> : vector<8xf32>
    %93 = vector.multi_reduction <add>, %92, %cst_35 [1] : vector<8x8xf32> to vector<8xf32>
    %94 = vector.shape_cast %93 : vector<8xf32> to vector<8x1xf32>
    %95 = tpu.reciprocal %94 {approx = true} : vector<8x1xf32> -> vector<8x1xf32>
    %96 = vector.broadcast %95 : vector<8x1xf32> to vector<8x8xf32>
    %97 = arith.mulf %92, %96 : vector<8x8xf32>
    %cst_36 = arith.constant dense<0.000000e+00> : vector<8x32xf32>
    %98 = tpu.matmul %97, %82, %cst_36 {dimension_numbers = #tpu.dot_dimension_numbers<[1], [0], [0], [1], [0, 0, 1, 1], [], []>} : vector<8x8xf32>, vector<8x32xf32>, vector<8x32xf32> -> vector<8x32xf32>
    %99 = arith.truncf %98 : vector<8x32xf32> to vector<8x32xbf16>
    %c96 = arith.constant 96 : index
    %c0_37 = arith.constant 0 : index
    %100 = vector.load %arg5[%c96, %c0_37] : memref<128x128xbf16, #tpu.memory_space<vmem>>, vector<32x128xbf16>
    %cst_38 = arith.constant dense<0.000000e+00> : vector<8x128xf32>
    %101 = tpu.matmul %99, %100, %cst_38 {dimension_numbers = #tpu.dot_dimension_numbers<[1], [0], [0], [1], [0, 0, 1, 1], [], []>} : vector<8x32xbf16>, vector<32x128xbf16>, vector<8x128xf32> -> vector<8x128xf32>
    %102 = arith.addf %79, %101 : vector<8x128xf32>
    %c0_39 = arith.constant 0 : index
    %c0_40 = arith.constant 0 : index
    %103 = vector.load %arg6[%c0_39, %c0_40] : memref<1x128xf32, #tpu.memory_space<vmem>>, vector<1x128xf32>
    %104 = vector.broadcast %103 : vector<1x128xf32> to vector<8x128xf32>
    %105 = arith.addf %102, %104 : vector<8x128xf32>
    %106 = arith.addf %105, %1 : vector<8x128xf32>
    %c0_41 = arith.constant 0 : index
    %c0_42 = arith.constant 0 : index
    %107 = vector.load %arg7[%c0_41, %c0_42] : memref<1x128xf32, #tpu.memory_space<vmem>>, vector<1x128xf32>
    %c0_43 = arith.constant 0 : index
    %c0_44 = arith.constant 0 : index
    %108 = vector.load %arg8[%c0_43, %c0_44] : memref<1x128xf32, #tpu.memory_space<vmem>>, vector<1x128xf32>
    %cst_45 = arith.constant dense<0.000000e+00> : vector<8xf32>
    %109 = vector.multi_reduction <add>, %106, %cst_45 [1] : vector<8x128xf32> to vector<8xf32>
    %110 = vector.shape_cast %109 : vector<8xf32> to vector<8x1xf32>
    %cst_46 = arith.constant 1.280000e+02 : f32
    %111 = vector.broadcast %cst_46 : f32 to vector<8x1xf32>
    %112 = arith.divf %110, %111 : vector<8x1xf32>
    %113 = vector.broadcast %112 : vector<8x1xf32> to vector<8x128xf32>
    %114 = arith.subf %106, %113 : vector<8x128xf32>
    %115 = arith.mulf %114, %114 : vector<8x128xf32>
    %cst_47 = arith.constant dense<0.000000e+00> : vector<8xf32>
    %116 = vector.multi_reduction <add>, %115, %cst_47 [1] : vector<8x128xf32> to vector<8xf32>
    %117 = vector.shape_cast %116 : vector<8xf32> to vector<8x1xf32>
    %cst_48 = arith.constant 1.280000e+02 : f32
    %118 = vector.broadcast %cst_48 : f32 to vector<8x1xf32>
    %119 = arith.divf %117, %118 : vector<8x1xf32>
    %cst_49 = arith.constant 9.99999974E-6 : f32
    %120 = vector.broadcast %cst_49 : f32 to vector<8x1xf32>
    %121 = arith.addf %119, %120 : vector<8x1xf32>
    %122 = math.rsqrt %121 : vector<8x1xf32>
    %123 = vector.broadcast %122 : vector<8x1xf32> to vector<8x128xf32>
    %124 = arith.mulf %114, %123 : vector<8x128xf32>
    %125 = vector.broadcast %107 : vector<1x128xf32> to vector<8x128xf32>
    %126 = arith.mulf %124, %125 : vector<8x128xf32>
    %127 = vector.broadcast %108 : vector<1x128xf32> to vector<8x128xf32>
    %128 = arith.addf %126, %127 : vector<8x128xf32>
    %129 = arith.truncf %128 : vector<8x128xf32> to vector<8x128xbf16>
    %c0_50 = arith.constant 0 : index
    %c0_51 = arith.constant 0 : index
    %130 = vector.load %arg9[%c0_50, %c0_51] : memref<128x256xbf16, #tpu.memory_space<vmem>>, vector<128x256xbf16>
    %cst_52 = arith.constant dense<0.000000e+00> : vector<8x256xf32>
    %131 = tpu.matmul %129, %130, %cst_52 {dimension_numbers = #tpu.dot_dimension_numbers<[1], [0], [0], [1], [0, 0, 1, 1], [], []>} : vector<8x128xbf16>, vector<128x256xbf16>, vector<8x256xf32> -> vector<8x256xf32>
    %c0_53 = arith.constant 0 : index
    %c0_54 = arith.constant 0 : index
    %132 = vector.load %arg10[%c0_53, %c0_54] : memref<1x256xf32, #tpu.memory_space<vmem>>, vector<1x256xf32>
    %133 = vector.broadcast %132 : vector<1x256xf32> to vector<8x256xf32>
    %134 = arith.addf %131, %133 : vector<8x256xf32>
    %135 = arith.mulf %134, %134 : vector<8x256xf32>
    %136 = arith.mulf %134, %135 : vector<8x256xf32>
    %cst_55 = arith.constant 4.471500e-02 : f32
    %137 = vector.broadcast %cst_55 : f32 to vector<8x256xf32>
    %138 = arith.mulf %137, %136 : vector<8x256xf32>
    %139 = arith.addf %134, %138 : vector<8x256xf32>
    %cst_56 = arith.constant 0.797884583 : f32
    %140 = vector.broadcast %cst_56 : f32 to vector<8x256xf32>
    %141 = arith.mulf %140, %139 : vector<8x256xf32>
    %142 = math.tanh %141 : vector<8x256xf32>
    %cst_57 = arith.constant 1.000000e+00 : f32
    %143 = vector.broadcast %cst_57 : f32 to vector<8x256xf32>
    %144 = arith.addf %143, %142 : vector<8x256xf32>
    %cst_58 = arith.constant 5.000000e-01 : f32
    %145 = vector.broadcast %cst_58 : f32 to vector<8x256xf32>
    %146 = arith.mulf %145, %144 : vector<8x256xf32>
    %147 = arith.mulf %134, %146 : vector<8x256xf32>
    %148 = arith.truncf %147 : vector<8x256xf32> to vector<8x256xbf16>
    %c0_59 = arith.constant 0 : index
    %c0_60 = arith.constant 0 : index
    %149 = vector.load %arg11[%c0_59, %c0_60] : memref<256x128xbf16, #tpu.memory_space<vmem>>, vector<256x128xbf16>
    %cst_61 = arith.constant dense<0.000000e+00> : vector<8x128xf32>
    %150 = tpu.matmul %148, %149, %cst_61 {dimension_numbers = #tpu.dot_dimension_numbers<[1], [0], [0], [1], [0, 0, 1, 1], [], []>} : vector<8x256xbf16>, vector<256x128xbf16>, vector<8x128xf32> -> vector<8x128xf32>
    %c0_62 = arith.constant 0 : index
    %c0_63 = arith.constant 0 : index
    %151 = vector.load %arg12[%c0_62, %c0_63] : memref<1x128xf32, #tpu.memory_space<vmem>>, vector<1x128xf32>
    %152 = vector.broadcast %151 : vector<1x128xf32> to vector<8x128xf32>
    %153 = arith.addf %150, %152 : vector<8x128xf32>
    %154 = arith.addf %153, %128 : vector<8x128xf32>
    %c0_64 = arith.constant 0 : index
    %c0_65 = arith.constant 0 : index
    %155 = vector.load %arg13[%c0_64, %c0_65] : memref<1x128xf32, #tpu.memory_space<vmem>>, vector<1x128xf32>
    %c0_66 = arith.constant 0 : index
    %c0_67 = arith.constant 0 : index
    %156 = vector.load %arg14[%c0_66, %c0_67] : memref<1x128xf32, #tpu.memory_space<vmem>>, vector<1x128xf32>
    %cst_68 = arith.constant dense<0.000000e+00> : vector<8xf32>
    %157 = vector.multi_reduction <add>, %154, %cst_68 [1] : vector<8x128xf32> to vector<8xf32>
    %158 = vector.shape_cast %157 : vector<8xf32> to vector<8x1xf32>
    %cst_69 = arith.constant 1.280000e+02 : f32
    %159 = vector.broadcast %cst_69 : f32 to vector<8x1xf32>
    %160 = arith.divf %158, %159 : vector<8x1xf32>
    %161 = vector.broadcast %160 : vector<8x1xf32> to vector<8x128xf32>
    %162 = arith.subf %154, %161 : vector<8x128xf32>
    %163 = arith.mulf %162, %162 : vector<8x128xf32>
    %cst_70 = arith.constant dense<0.000000e+00> : vector<8xf32>
    %164 = vector.multi_reduction <add>, %163, %cst_70 [1] : vector<8x128xf32> to vector<8xf32>
    %165 = vector.shape_cast %164 : vector<8xf32> to vector<8x1xf32>
    %cst_71 = arith.constant 1.280000e+02 : f32
    %166 = vector.broadcast %cst_71 : f32 to vector<8x1xf32>
    %167 = arith.divf %165, %166 : vector<8x1xf32>
    %cst_72 = arith.constant 9.99999974E-6 : f32
    %168 = vector.broadcast %cst_72 : f32 to vector<8x1xf32>
    %169 = arith.addf %167, %168 : vector<8x1xf32>
    %170 = math.rsqrt %169 : vector<8x1xf32>
    %171 = vector.broadcast %170 : vector<8x1xf32> to vector<8x128xf32>
    %172 = arith.mulf %162, %171 : vector<8x128xf32>
    %173 = vector.broadcast %155 : vector<1x128xf32> to vector<8x128xf32>
    %174 = arith.mulf %172, %173 : vector<8x128xf32>
    %175 = vector.broadcast %156 : vector<1x128xf32> to vector<8x128xf32>
    %176 = arith.addf %174, %175 : vector<8x128xf32>
    %c0_73 = arith.constant 0 : index
    %c0_74 = arith.constant 0 : index
    %c0_75 = arith.constant 0 : index
    %177 = vector.load %arg15[%c0_73, %c0_74, %c0_75] : memref<1x8x128xf32, #tpu.memory_space<vmem>>, vector<1x8x128xf32>
    %178 = vector.shape_cast %177 : vector<1x8x128xf32> to vector<8x128xf32>
    %179 = vector.shape_cast %176 : vector<8x128xf32> to vector<1x8x128xf32>
    tpu.vector_store %arg15[%c0_73, %c0_74, %c0_75], %179 {strides = array<i32>} : memref<1x8x128xf32, #tpu.memory_space<vmem>>, vector<1x8x128xf32>,
    return
  }
  func.func @transform_0(%arg0: i32) -> (i32, i32, i32) {
    %c0_i32 = arith.constant 0 : i32
    %c0_i32_0 = arith.constant 0 : i32
    %c0_i32_1 = arith.constant 0 : i32
    return %arg0, %c0_i32, %c0_i32_0 : i32, i32, i32
  }
  func.func @transform_1(%arg0: i32) -> (i32, i32, i32) {
    %c0_i32 = arith.constant 0 : i32
    %c0_i32_0 = arith.constant 0 : i32
    %c0_i32_1 = arith.constant 0 : i32
    return %arg0, %c0_i32, %c0_i32_0 : i32, i32, i32
  }
  func.func @transform_2(%arg0: i32) -> (i32, i32) {
    %c0_i32 = arith.constant 0 : i32
    %c0_i32_0 = arith.constant 0 : i32
    %c0_i32_1 = arith.constant 0 : i32
    return %c0_i32, %c0_i32_0 : i32, i32
  }
  func.func @transform_3(%arg0: i32) -> (i32, i32) {
    %c0_i32 = arith.constant 0 : i32
    %c0_i32_0 = arith.constant 0 : i32
    %c0_i32_1 = arith.constant 0 : i32
    return %c0_i32, %c0_i32_0 : i32, i32
  }
  func.func @transform_4(%arg0: i32) -> (i32, i32) {
    %c0_i32 = arith.constant 0 : i32
    %c0_i32_0 = arith.constant 0 : i32
    %c0_i32_1 = arith.constant 0 : i32
    return %c0_i32, %c0_i32_0 : i32, i32
  }
  func.func @transform_5(%arg0: i32) -> (i32, i32) {
    %c0_i32 = arith.constant 0 : i32
    %c0_i32_0 = arith.constant 0 : i32
    %c0_i32_1 = arith.constant 0 : i32
    return %c0_i32, %c0_i32_0 : i32, i32
  }
  func.func @transform_6(%arg0: i32) -> (i32, i32) {
    %c0_i32 = arith.constant 0 : i32
    %c0_i32_0 = arith.constant 0 : i32
    %c0_i32_1 = arith.constant 0 : i32
    return %c0_i32, %c0_i32_0 : i32, i32
  }
  func.func @transform_7(%arg0: i32) -> (i32, i32) {
    %c0_i32 = arith.constant 0 : i32
    %c0_i32_0 = arith.constant 0 : i32
    %c0_i32_1 = arith.constant 0 : i32
    return %c0_i32, %c0_i32_0 : i32, i32
  }
  func.func @transform_8(%arg0: i32) -> (i32, i32) {
    %c0_i32 = arith.constant 0 : i32
    %c0_i32_0 = arith.constant 0 : i32
    %c0_i32_1 = arith.constant 0 : i32
    return %c0_i32, %c0_i32_0 : i32, i32
  }
  func.func @transform_9(%arg0: i32) -> (i32, i32) {
    %c0_i32 = arith.constant 0 : i32
    %c0_i32_0 = arith.constant 0 : i32
    %c0_i32_1 = arith.constant 0 : i32
    return %c0_i32, %c0_i32_0 : i32, i32
  }
  func.func @transform_10(%arg0: i32) -> (i32, i32) {
    %c0_i32 = arith.constant 0 : i32
    %c0_i32_0 = arith.constant 0 : i32
    %c0_i32_1 = arith.constant 0 : i32
    return %c0_i32, %c0_i32_0 : i32, i32
  }
  func.func @transform_11(%arg0: i32) -> (i32, i32) {
    %c0_i32 = arith.constant 0 : i32
    %c0_i32_0 = arith.constant 0 : i32
    %c0_i32_1 = arith.constant 0 : i32
    return %c0_i32, %c0_i32_0 : i32, i32
  }
  func.func @transform_12(%arg0: i32) -> (i32, i32) {
    %c0_i32 = arith.constant 0 : i32
    %c0_i32_0 = arith.constant 0 : i32
    %c0_i32_1 = arith.constant 0 : i32
    return %c0_i32, %c0_i32_0 : i32, i32
  }
  func.func @transform_13(%arg0: i32) -> (i32, i32) {
    %c0_i32 = arith.constant 0 : i32
    %c0_i32_0 = arith.constant 0 : i32
    %c0_i32_1 = arith.constant 0 : i32
    return %c0_i32, %c0_i32_0 : i32, i32
  }
  func.func @transform_14(%arg0: i32) -> (i32, i32, i32) {
    %c0_i32 = arith.constant 0 : i32
    %c0_i32_0 = arith.constant 0 : i32
    %c0_i32_1 = arith.constant 0 : i32
    return %arg0, %c0_i32, %c0_i32_0 : i32, i32, i32
  }
}

module attributes {stable_mosaic.version = 11 : i64} {
  func.func @_encoder_layer_kernel(%arg0: i32, %arg1: memref<1x8x128xf32, #tpu.memory_space<vmem>>, %arg2: memref<1x1x8xf32, #tpu.memory_space<vmem>>, %arg3: memref<128x384xbf16, #tpu.memory_space<vmem>>, %arg4: memref<1x384xf32, #tpu.memory_space<vmem>>, %arg5: memref<128x128xbf16, #tpu.memory_space<vmem>>, %arg6: memref<1x128xf32, #tpu.memory_space<vmem>>, %arg7: memref<1x128xf32, #tpu.memory_space<vmem>>, %arg8: memref<1x128xf32, #tpu.memory_space<vmem>>, %arg9: memref<128x256xbf16, #tpu.memory_space<vmem>>, %arg10: memref<1x256xf32, #tpu.memory_space<vmem>>, %arg11: memref<256x128xbf16, #tpu.memory_space<vmem>>, %arg12: memref<1x128xf32, #tpu.memory_space<vmem>>, %arg13: memref<1x128xf32, #tpu.memory_space<vmem>>, %arg14: memref<1x128xf32, #tpu.memory_space<vmem>>, %arg15: memref<1x8x128xf32, #tpu.memory_space<vmem>>) attributes {dimension_semantics = [#tpu.dimension_semantics<parallel>], iteration_bounds = array<i64: 2>, scalar_prefetch = 0 : i64, scratch_operands = 0 : i64, tpu.core_type = #tpu.core_type<tc>, window_params = [{transform_indices = @transform_0, window_bounds = array<i64: 1, 8, 128>}, {transform_indices = @transform_1, window_bounds = array<i64: 1, 1, 8>}, {pipeline_mode = #tpu.pipeline_mode<synchronous>, transform_indices = @transform_2, window_bounds = array<i64: 128, 384>}, {pipeline_mode = #tpu.pipeline_mode<synchronous>, transform_indices = @transform_3, window_bounds = array<i64: 1, 384>}, {pipeline_mode = #tpu.pipeline_mode<synchronous>, transform_indices = @transform_4, window_bounds = array<i64: 128, 128>}, {pipeline_mode = #tpu.pipeline_mode<synchronous>, transform_indices = @transform_5, window_bounds = array<i64: 1, 128>}, {pipeline_mode = #tpu.pipeline_mode<synchronous>, transform_indices = @transform_6, window_bounds = array<i64: 1, 128>}, {pipeline_mode = #tpu.pipeline_mode<synchronous>, transform_indices = @transform_7, window_bounds = array<i64: 1, 128>}, {pipeline_mode = #tpu.pipeline_mode<synchronous>, transform_indices = @transform_8, window_bounds = array<i64: 128, 256>}, {pipeline_mode = #tpu.pipeline_mode<synchronous>, transform_indices = @transform_9, window_bounds = array<i64: 1, 256>}, {pipeline_mode = #tpu.pipeline_mode<synchronous>, transform_indices = @transform_10, window_bounds = array<i64: 256, 128>}, {pipeline_mode = #tpu.pipeline_mode<synchronous>, transform_indices = @transform_11, window_bounds = array<i64: 1, 128>}, {pipeline_mode = #tpu.pipeline_mode<synchronous>, transform_indices = @transform_12, window_bounds = array<i64: 1, 128>}, {pipeline_mode = #tpu.pipeline_mode<synchronous>, transform_indices = @transform_13, window_bounds = array<i64: 1, 128>}, {transform_indices = @transform_14, window_bounds = array<i64: 1, 8, 128>}]} {
    %c0 = arith.constant 0 : index
    %c0_0 = arith.constant 0 : index
    %c0_1 = arith.constant 0 : index
    %0 = vector.load %arg1[%c0, %c0_0, %c0_1] : memref<1x8x128xf32, #tpu.memory_space<vmem>>, vector<1x8x128xf32>
    %1 = vector.shape_cast %0 : vector<1x8x128xf32> to vector<8x128xf32>
    %c0_2 = arith.constant 0 : index
    %c0_3 = arith.constant 0 : index
    %c0_4 = arith.constant 0 : index
    %2 = vector.load %arg2[%c0_2, %c0_3, %c0_4] : memref<1x1x8xf32, #tpu.memory_space<vmem>>, vector<1x1x8xf32>
    %3 = vector.shape_cast %2 : vector<1x1x8xf32> to vector<1x8xf32>
    %4 = arith.truncf %1 : vector<8x128xf32> to vector<8x128xbf16>
    %c0_5 = arith.constant 0 : index
    %c0_6 = arith.constant 0 : index
    %5 = vector.load %arg3[%c0_5, %c0_6] : memref<128x384xbf16, #tpu.memory_space<vmem>>, vector<128x384xbf16>
    %cst = arith.constant dense<0.000000e+00> : vector<8x384xf32>
    %6 = tpu.matmul %4, %5, %cst {dimension_numbers = #tpu.dot_dimension_numbers<[1], [0], [0], [1], [0, 0, 1, 1], [], []>} : vector<8x128xbf16>, vector<128x384xbf16>, vector<8x384xf32> -> vector<8x384xf32>
    %c0_7 = arith.constant 0 : index
    %c0_8 = arith.constant 0 : index
    %7 = vector.load %arg4[%c0_7, %c0_8] : memref<1x384xf32, #tpu.memory_space<vmem>>, vector<1x384xf32>
    %8 = vector.broadcast %7 : vector<1x384xf32> to vector<8x384xf32>
    %9 = arith.addf %6, %8 : vector<8x384xf32>
    %cst_9 = arith.constant 0.000000e+00 : f32
    %10 = vector.broadcast %cst_9 : f32 to vector<8x128xf32>
    %11 = vector.extract_strided_slice %9 {offsets = [0, 0], sizes = [8, 32], strides = [1, 1]} : vector<8x384xf32> to vector<8x32xf32>
    %12 = vector.extract_strided_slice %9 {offsets = [0, 128], sizes = [8, 32], strides = [1, 1]} : vector<8x384xf32> to vector<8x32xf32>
    %13 = vector.extract_strided_slice %9 {offsets = [0, 256], sizes = [8, 32], strides = [1, 1]} : vector<8x384xf32> to vector<8x32xf32>
    %cst_10 = arith.constant dense<0.000000e+00> : vector<8x8xf32>
    %14 = tpu.matmul %11, %12, %cst_10 {dimension_numbers = #tpu.dot_dimension_numbers<[1], [1], [0], [0], [0, 0, 1, 0], [], []>} : vector<8x32xf32>, vector<8x32xf32>, vector<8x8xf32> -> vector<8x8xf32>
    %cst_11 = arith.constant 0.176776692 : f32
    %15 = vector.broadcast %cst_11 : f32 to vector<8x8xf32>
    %16 = arith.mulf %14, %15 : vector<8x8xf32>
    %17 = vector.broadcast %3 : vector<1x8xf32> to vector<8x8xf32>
    %18 = arith.addf %16, %17 : vector<8x8xf32>
    %cst_12 = arith.constant dense<0xFF800000> : vector<8xf32>
    %19 = vector.multi_reduction <maximumf>, %18, %cst_12 [1] : vector<8x8xf32> to vector<8xf32>
    %20 = vector.shape_cast %19 : vector<8xf32> to vector<8x1xf32>
    %21 = vector.broadcast %20 : vector<8x1xf32> to vector<8x8xf32>
    %22 = arith.subf %18, %21 : vector<8x8xf32>
    %23 = math.exp %22 : vector<8x8xf32>
    %cst_13 = arith.constant dense<0.000000e+00> : vector<8xf32>
    %24 = vector.multi_reduction <add>, %23, %cst_13 [1] : vector<8x8xf32> to vector<8xf32>
    %25 = vector.shape_cast %24 : vector<8xf32> to vector<8x1xf32>
    %26 = tpu.reciprocal %25 {approx = true} : vector<8x1xf32> -> vector<8x1xf32>
    %27 = vector.broadcast %26 : vector<8x1xf32> to vector<8x8xf32>
    %28 = arith.mulf %23, %27 : vector<8x8xf32>
    %cst_14 = arith.constant dense<0.000000e+00> : vector<8x32xf32>
    %29 = tpu.matmul %28, %13, %cst_14 {dimension_numbers = #tpu.dot_dimension_numbers<[1], [0], [0], [1], [0, 0, 1, 1], [], []>} : vector<8x8xf32>, vector<8x32xf32>, vector<8x32xf32> -> vector<8x32xf32>
    %30 = arith.truncf %29 : vector<8x32xf32> to vector<8x32xbf16>
    %c0_15 = arith.constant 0 : index
    %c0_16 = arith.constant 0 : index
    %31 = vector.load %arg5[%c0_15, %c0_16] : memref<128x128xbf16, #tpu.memory_space<vmem>>, vector<32x128xbf16>
    %cst_17 = arith.constant dense<0.000000e+00> : vector<8x128xf32>
    %32 = tpu.matmul %30, %31, %cst_17 {dimension_numbers = #tpu.dot_dimension_numbers<[1], [0], [0], [1], [0, 0, 1, 1], [], []>} : vector<8x32xbf16>, vector<32x128xbf16>, vector<8x128xf32> -> vector<8x128xf32>
    %33 = arith.addf %10, %32 : vector<8x128xf32>
    %34 = vector.extract_strided_slice %9 {offsets = [0, 32], sizes = [8, 32], strides = [1, 1]} : vector<8x384xf32> to vector<8x32xf32>
    %35 = vector.extract_strided_slice %9 {offsets = [0, 160], sizes = [8, 32], strides = [1, 1]} : vector<8x384xf32> to vector<8x32xf32>
    %36 = vector.extract_strided_slice %9 {offsets = [0, 288], sizes = [8, 32], strides = [1, 1]} : vector<8x384xf32> to vector<8x32xf32>
    %cst_18 = arith.constant dense<0.000000e+00> : vector<8x8xf32>
    %37 = tpu.matmul %34, %35, %cst_18 {dimension_numbers = #tpu.dot_dimension_numbers<[1], [1], [0], [0], [0, 0, 1, 0], [], []>} : vector<8x32xf32>, vector<8x32xf32>, vector<8x8xf32> -> vector<8x8xf32>
    %cst_19 = arith.constant 0.176776692 : f32
    %38 = vector.broadcast %cst_19 : f32 to vector<8x8xf32>
    %39 = arith.mulf %37, %38 : vector<8x8xf32>
    %40 = vector.broadcast %3 : vector<1x8xf32> to vector<8x8xf32>
    %41 = arith.addf %39, %40 : vector<8x8xf32>
    %cst_20 = arith.constant dense<0xFF800000> : vector<8xf32>
    %42 = vector.multi_reduction <maximumf>, %41, %cst_20 [1] : vector<8x8xf32> to vector<8xf32>
    %43 = vector.shape_cast %42 : vector<8xf32> to vector<8x1xf32>
    %44 = vector.broadcast %43 : vector<8x1xf32> to vector<8x8xf32>
    %45 = arith.subf %41, %44 : vector<8x8xf32>
    %46 = math.exp %45 : vector<8x8xf32>
    %cst_21 = arith.constant dense<0.000000e+00> : vector<8xf32>
    %47 = vector.multi_reduction <add>, %46, %cst_21 [1] : vector<8x8xf32> to vector<8xf32>
    %48 = vector.shape_cast %47 : vector<8xf32> to vector<8x1xf32>
    %49 = tpu.reciprocal %48 {approx = true} : vector<8x1xf32> -> vector<8x1xf32>
    %50 = vector.broadcast %49 : vector<8x1xf32> to vector<8x8xf32>
    %51 = arith.mulf %46, %50 : vector<8x8xf32>
    %cst_22 = arith.constant dense<0.000000e+00> : vector<8x32xf32>
    %52 = tpu.matmul %51, %36, %cst_22 {dimension_numbers = #tpu.dot_dimension_numbers<[1], [0], [0], [1], [0, 0, 1, 1], [], []>} : vector<8x8xf32>, vector<8x32xf32>, vector<8x32xf32> -> vector<8x32xf32>
    %53 = arith.truncf %52 : vector<8x32xf32> to vector<8x32xbf16>
    %c32 = arith.constant 32 : index
    %c0_23 = arith.constant 0 : index
    %54 = vector.load %arg5[%c32, %c0_23] : memref<128x128xbf16, #tpu.memory_space<vmem>>, vector<32x128xbf16>
    %cst_24 = arith.constant dense<0.000000e+00> : vector<8x128xf32>
    %55 = tpu.matmul %53, %54, %cst_24 {dimension_numbers = #tpu.dot_dimension_numbers<[1], [0], [0], [1], [0, 0, 1, 1], [], []>} : vector<8x32xbf16>, vector<32x128xbf16>, vector<8x128xf32> -> vector<8x128xf32>
    %56 = arith.addf %33, %55 : vector<8x128xf32>
    %57 = vector.extract_strided_slice %9 {offsets = [0, 64], sizes = [8, 32], strides = [1, 1]} : vector<8x384xf32> to vector<8x32xf32>
    %58 = vector.extract_strided_slice %9 {offsets = [0, 192], sizes = [8, 32], strides = [1, 1]} : vector<8x384xf32> to vector<8x32xf32>
    %59 = vector.extract_strided_slice %9 {offsets = [0, 320], sizes = [8, 32], strides = [1, 1]} : vector<8x384xf32> to vector<8x32xf32>
    %cst_25 = arith.constant dense<0.000000e+00> : vector<8x8xf32>
    %60 = tpu.matmul %57, %58, %cst_25 {dimension_numbers = #tpu.dot_dimension_numbers<[1], [1], [0], [0], [0, 0, 1, 0], [], []>} : vector<8x32xf32>, vector<8x32xf32>, vector<8x8xf32> -> vector<8x8xf32>
    %cst_26 = arith.constant 0.176776692 : f32
    %61 = vector.broadcast %cst_26 : f32 to vector<8x8xf32>
    %62 = arith.mulf %60, %61 : vector<8x8xf32>
    %63 = vector.broadcast %3 : vector<1x8xf32> to vector<8x8xf32>
    %64 = arith.addf %62, %63 : vector<8x8xf32>
    %cst_27 = arith.constant dense<0xFF800000> : vector<8xf32>
    %65 = vector.multi_reduction <maximumf>, %64, %cst_27 [1] : vector<8x8xf32> to vector<8xf32>
    %66 = vector.shape_cast %65 : vector<8xf32> to vector<8x1xf32>
    %67 = vector.broadcast %66 : vector<8x1xf32> to vector<8x8xf32>
    %68 = arith.subf %64, %67 : vector<8x8xf32>
    %69 = math.exp %68 : vector<8x8xf32>
    %cst_28 = arith.constant dense<0.000000e+00> : vector<8xf32>
    %70 = vector.multi_reduction <add>, %69, %cst_28 [1] : vector<8x8xf32> to vector<8xf32>
    %71 = vector.shape_cast %70 : vector<8xf32> to vector<8x1xf32>
    %72 = tpu.reciprocal %71 {approx = true} : vector<8x1xf32> -> vector<8x1xf32>
    %73 = vector.broadcast %72 : vector<8x1xf32> to vector<8x8xf32>
    %74 = arith.mulf %69, %73 : vector<8x8xf32>
    %cst_29 = arith.constant dense<0.000000e+00> : vector<8x32xf32>
    %75 = tpu.matmul %74, %59, %cst_29 {dimension_numbers = #tpu.dot_dimension_numbers<[1], [0], [0], [1], [0, 0, 1, 1], [], []>} : vector<8x8xf32>, vector<8x32xf32>, vector<8x32xf32> -> vector<8x32xf32>
    %76 = arith.truncf %75 : vector<8x32xf32> to vector<8x32xbf16>
    %c64 = arith.constant 64 : index
    %c0_30 = arith.constant 0 : index
    %77 = vector.load %arg5[%c64, %c0_30] : memref<128x128xbf16, #tpu.memory_space<vmem>>, vector<32x128xbf16>
    %cst_31 = arith.constant dense<0.000000e+00> : vector<8x128xf32>
    %78 = tpu.matmul %76, %77, %cst_31 {dimension_numbers = #tpu.dot_dimension_numbers<[1], [0], [0], [1], [0, 0, 1, 1], [], []>} : vector<8x32xbf16>, vector<32x128xbf16>, vector<8x128xf32> -> vector<8x128xf32>
    %79 = arith.addf %56, %78 : vector<8x128xf32>
    %80 = vector.extract_strided_slice %9 {offsets = [0, 96], sizes = [8, 32], strides = [1, 1]} : vector<8x384xf32> to vector<8x32xf32>
    %81 = vector.extract_strided_slice %9 {offsets = [0, 224], sizes = [8, 32], strides = [1, 1]} : vector<8x384xf32> to vector<8x32xf32>
    %82 = vector.extract_strided_slice %9 {offsets = [0, 352], sizes = [8, 32], strides = [1, 1]} : vector<8x384xf32> to vector<8x32xf32>
    %cst_32 = arith.constant dense<0.000000e+00> : vector<8x8xf32>
    %83 = tpu.matmul %80, %81, %cst_32 {dimension_numbers = #tpu.dot_dimension_numbers<[1], [1], [0], [0], [0, 0, 1, 0], [], []>} : vector<8x32xf32>, vector<8x32xf32>, vector<8x8xf32> -> vector<8x8xf32>
    %cst_33 = arith.constant 0.176776692 : f32
    %84 = vector.broadcast %cst_33 : f32 to vector<8x8xf32>
    %85 = arith.mulf %83, %84 : vector<8x8xf32>
    %86 = vector.broadcast %3 : vector<1x8xf32> to vector<8x8xf32>
    %87 = arith.addf %85, %86 : vector<8x8xf32>
    %cst_34 = arith.constant dense<0xFF800000> : vector<8xf32>
    %88 = vector.multi_reduction <maximumf>, %87, %cst_34 [1] : vector<8x8xf32> to vector<8xf32>
    %89 = vector.shape_cast %88 : vector<8xf32> to vector<8x1xf32>
    %90 = vector.broadcast %89 : vector<8x1xf32> to vector<8x8xf32>
    %91 = arith.subf %87, %90 : vector<8x8xf32>
    %92 = math.exp %91 : vector<8x8xf32>
    %cst_35 = arith.constant dense<0.000000e+00> : vector<8xf32>
    %93 = vector.multi_reduction <add>, %92, %cst_35 [1] : vector<8x8xf32> to vector<8xf32>
    %94 = vector.shape_cast %93 : vector<8xf32> to vector<8x1xf32>
    %95 = tpu.reciprocal %94 {approx = true} : vector<8x1xf32> -> vector<8x1xf32>
    %96 = vector.broadcast %95 : vector<8x1xf32> to vector<8x8xf32>
    %97 = arith.mulf %92, %96 : vector<8x8xf32>
    %cst_36 = arith.constant dense<0.000000e+00> : vector<8x32xf32>
    %98 = tpu.matmul %97, %82, %cst_36 {dimension_numbers = #tpu.dot_dimension_numbers<[1], [0], [0], [1], [0, 0, 1, 1], [], []>} : vector<8x8xf32>, vector<8x32xf32>, vector<8x32xf32> -> vector<8x32xf32>
    %99 = arith.truncf %98 : vector<8x32xf32> to vector<8x32xbf16>
    %c96 = arith.constant 96 : index
    %c0_37 = arith.constant 0 : index
    %100 = vector.load %arg5[%c96, %c0_37] : memref<128x128xbf16, #tpu.memory_space<vmem>>, vector<32x128xbf16>
    %cst_38 = arith.constant dense<0.000000e+00> : vector<8x128xf32>
    %101 = tpu.matmul %99, %100, %cst_38 {dimension_numbers = #tpu.dot_dimension_numbers<[1], [0], [0], [1], [0, 0, 1, 1], [], []>} : vector<8x32xbf16>, vector<32x128xbf16>, vector<8x128xf32> -> vector<8x128xf32>
    %102 = arith.addf %79, %101 : vector<8x128xf32>
    %c0_39 = arith.constant 0 : index
    %c0_40 = arith.constant 0 : index
    %103 = vector.load %arg6[%c0_39, %c0_40] : memref<1x128xf32, #tpu.memory_space<vmem>>, vector<1x128xf32>
    %104 = vector.broadcast %103 : vector<1x128xf32> to vector<8x128xf32>
    %105 = arith.addf %102, %104 : vector<8x128xf32>
    %106 = arith.addf %105, %1 : vector<8x128xf32>
    %c0_41 = arith.constant 0 : index
    %c0_42 = arith.constant 0 : index
    %107 = vector.load %arg7[%c0_41, %c0_42] : memref<1x128xf32, #tpu.memory_space<vmem>>, vector<1x128xf32>
    %c0_43 = arith.constant 0 : index
    %c0_44 = arith.constant 0 : index
    %108 = vector.load %arg8[%c0_43, %c0_44] : memref<1x128xf32, #tpu.memory_space<vmem>>, vector<1x128xf32>
    %cst_45 = arith.constant dense<0.000000e+00> : vector<8xf32>
    %109 = vector.multi_reduction <add>, %106, %cst_45 [1] : vector<8x128xf32> to vector<8xf32>
    %110 = vector.shape_cast %109 : vector<8xf32> to vector<8x1xf32>
    %cst_46 = arith.constant 1.280000e+02 : f32
    %111 = vector.broadcast %cst_46 : f32 to vector<8x1xf32>
    %112 = arith.divf %110, %111 : vector<8x1xf32>
    %113 = vector.broadcast %112 : vector<8x1xf32> to vector<8x128xf32>
    %114 = arith.subf %106, %113 : vector<8x128xf32>
    %115 = arith.mulf %114, %114 : vector<8x128xf32>
    %cst_47 = arith.constant dense<0.000000e+00> : vector<8xf32>
    %116 = vector.multi_reduction <add>, %115, %cst_47 [1] : vector<8x128xf32> to vector<8xf32>
    %117 = vector.shape_cast %116 : vector<8xf32> to vector<8x1xf32>
    %cst_48 = arith.constant 1.280000e+02 : f32
    %118 = vector.broadcast %cst_48 : f32 to vector<8x1xf32>
    %119 = arith.divf %117, %118 : vector<8x1xf32>
    %cst_49 = arith.constant 9.99999974E-6 : f32
    %120 = vector.broadcast %cst_49 : f32 to vector<8x1xf32>
    %121 = arith.addf %119, %120 : vector<8x1xf32>
    %122 = math.rsqrt %121 : vector<8x1xf32>
    %123 = vector.broadcast %122 : vector<8x1xf32> to vector<8x128xf32>
    %124 = arith.mulf %114, %123 : vector<8x128xf32>
    %125 = vector.broadcast %107 : vector<1x128xf32> to vector<8x128xf32>
    %126 = arith.mulf %124, %125 : vector<8x128xf32>
    %127 = vector.broadcast %108 : vector<1x128xf32> to vector<8x128xf32>
    %128 = arith.addf %126, %127 : vector<8x128xf32>
    %129 = arith.truncf %128 : vector<8x128xf32> to vector<8x128xbf16>
    %c0_50 = arith.constant 0 : index
    %c0_51 = arith.constant 0 : index
    %130 = vector.load %arg9[%c0_50, %c0_51] : memref<128x256xbf16, #tpu.memory_space<vmem>>, vector<128x256xbf16>
    %cst_52 = arith.constant dense<0.000000e+00> : vector<8x256xf32>
    %131 = tpu.matmul %129, %130, %cst_52 {dimension_numbers = #tpu.dot_dimension_numbers<[1], [0], [0], [1], [0, 0, 1, 1], [], []>} : vector<8x128xbf16>, vector<128x256xbf16>, vector<8x256xf32> -> vector<8x256xf32>
    %c0_53 = arith.constant 0 : index
    %c0_54 = arith.constant 0 : index
    %132 = vector.load %arg10[%c0_53, %c0_54] : memref<1x256xf32, #tpu.memory_space<vmem>>, vector<1x256xf32>
    %133 = vector.broadcast %132 : vector<1x256xf32> to vector<8x256xf32>
    %134 = arith.addf %131, %133 : vector<8x256xf32>
    %135 = arith.mulf %134, %134 : vector<8x256xf32>
    %136 = arith.mulf %134, %135 : vector<8x256xf32>
    %cst_55 = arith.constant 4.471500e-02 : f32
    %137 = vector.broadcast %cst_55 : f32 to vector<8x256xf32>
    %138 = arith.mulf %137, %136 : vector<8x256xf32>
    %139 = arith.addf %134, %138 : vector<8x256xf32>
    %cst_56 = arith.constant 0.797884583 : f32
    %140 = vector.broadcast %cst_56 : f32 to vector<8x256xf32>
    %141 = arith.mulf %140, %139 : vector<8x256xf32>
    %142 = math.tanh %141 : vector<8x256xf32>
    %cst_57 = arith.constant 1.000000e+00 : f32
    %143 = vector.broadcast %cst_57 : f32 to vector<8x256xf32>
    %144 = arith.addf %143, %142 : vector<8x256xf32>
    %cst_58 = arith.constant 5.000000e-01 : f32
    %145 = vector.broadcast %cst_58 : f32 to vector<8x256xf32>
    %146 = arith.mulf %145, %144 : vector<8x256xf32>
    %147 = arith.mulf %134, %146 : vector<8x256xf32>
    %148 = arith.truncf %147 : vector<8x256xf32> to vector<8x256xbf16>
    %c0_59 = arith.constant 0 : index
    %c0_60 = arith.constant 0 : index
    %149 = vector.load %arg11[%c0_59, %c0_60] : memref<256x128xbf16, #tpu.memory_space<vmem>>, vector<256x128xbf16>
    %cst_61 = arith.constant dense<0.000000e+00> : vector<8x128xf32>
    %150 = tpu.matmul %148, %149, %cst_61 {dimension_numbers = #tpu.dot_dimension_numbers<[1], [0], [0], [1], [0, 0, 1, 1], [], []>} : vector<8x256xbf16>, vector<256x128xbf16>, vector<8x128xf32> -> vector<8x128xf32>
    %c0_62 = arith.constant 0 : index
    %c0_63 = arith.constant 0 : index
    %151 = vector.load %arg12[%c0_62, %c0_63] : memref<1x128xf32, #tpu.memory_space<vmem>>, vector<1x128xf32>
    %152 = vector.broadcast %151 : vector<1x128xf32> to vector<8x128xf32>
    %153 = arith.addf %150, %152 : vector<8x128xf32>
    %154 = arith.addf %153, %128 : vector<8x128xf32>
    %c0_64 = arith.constant 0 : index
    %c0_65 = arith.constant 0 : index
    %155 = vector.load %arg13[%c0_64, %c0_65] : memref<1x128xf32, #tpu.memory_space<vmem>>, vector<1x128xf32>
    %c0_66 = arith.constant 0 : index
    %c0_67 = arith.constant 0 : index
    %156 = vector.load %arg14[%c0_66, %c0_67] : memref<1x128xf32, #tpu.memory_space<vmem>>, vector<1x128xf32>
    %cst_68 = arith.constant dense<0.000000e+00> : vector<8xf32>
    %157 = vector.multi_reduction <add>, %154, %cst_68 [1] : vector<8x128xf32> to vector<8xf32>
    %158 = vector.shape_cast %157 : vector<8xf32> to vector<8x1xf32>
    %cst_69 = arith.constant 1.280000e+02 : f32
    %159 = vector.broadcast %cst_69 : f32 to vector<8x1xf32>
    %160 = arith.divf %158, %159 : vector<8x1xf32>
    %161 = vector.broadcast %160 : vector<8x1xf32> to vector<8x128xf32>
    %162 = arith.subf %154, %161 : vector<8x128xf32>
    %163 = arith.mulf %162, %162 : vector<8x128xf32>
    %cst_70 = arith.constant dense<0.000000e+00> : vector<8xf32>
    %164 = vector.multi_reduction <add>, %163, %cst_70 [1] : vector<8x128xf32> to vector<8xf32>
    %165 = vector.shape_cast %164 : vector<8xf32> to vector<8x1xf32>
    %cst_71 = arith.constant 1.280000e+02 : f32
    %166 = vector.broadcast %cst_71 : f32 to vector<8x1xf32>
    %167 = arith.divf %165, %166 : vector<8x1xf32>
    %cst_72 = arith.constant 9.99999974E-6 : f32
    %168 = vector.broadcast %cst_72 : f32 to vector<8x1xf32>
    %169 = arith.addf %167, %168 : vector<8x1xf32>
    %170 = math.rsqrt %169 : vector<8x1xf32>
    %171 = vector.broadcast %170 : vector<8x1xf32> to vector<8x128xf32>
    %172 = arith.mulf %162, %171 : vector<8x128xf32>
    %173 = vector.broadcast %155 : vector<1x128xf32> to vector<8x128xf32>
    %174 = arith.mulf %172, %173 : vector<8x128xf32>
    %175 = vector.broadcast %156 : vector<1x128xf32> to vector<8x128xf32>
    %176 = arith.addf %174, %175 : vector<8x128xf32>
    %c0_73 = arith.constant 0 : index
    %c0_74 = arith.constant 0 : index
    %c0_75 = arith.constant 0 : index
    %177 = vector.load %arg15[%c0_73, %c0_74, %c0_75] : memref<1x8x128xf32, #tpu.memory_space<vmem>>, vector<1x8x128xf32>
    %178 = vector.shape_cast %177 : vector<1x8x128xf32> to vector<8x128xf32>
    %179 = vector.shape_cast %176 : vector<8x128xf32> to vector<1x8x128xf32>
    tpu.vector_store %arg15[%c0_73, %c0_74, %c0_75], %179 {strides = array<i32>} : memref<1x8x128xf32, #tpu.memory_space<vmem>>, vector<1x8x128xf32>,
    return
  }
  func.func @transform_0(%arg0: i32) -> (i32, i32, i32) {
    %c0_i32 = arith.constant 0 : i32
    %c0_i32_0 = arith.constant 0 : i32
    %c0_i32_1 = arith.constant 0 : i32
    return %arg0, %c0_i32, %c0_i32_0 : i32, i32, i32
  }
  func.func @transform_1(%arg0: i32) -> (i32, i32, i32) {
    %c0_i32 = arith.constant 0 : i32
    %c0_i32_0 = arith.constant 0 : i32
    %c0_i32_1 = arith.constant 0 : i32
    return %arg0, %c0_i32, %c0_i32_0 : i32, i32, i32
  }
  func.func @transform_2(%arg0: i32) -> (i32, i32) {
    %c0_i32 = arith.constant 0 : i32
    %c0_i32_0 = arith.constant 0 : i32
    %c0_i32_1 = arith.constant 0 : i32
    return %c0_i32, %c0_i32_0 : i32, i32
  }
  func.func @transform_3(%arg0: i32) -> (i32, i32) {
    %c0_i32 = arith.constant 0 : i32
    %c0_i32_0 = arith.constant 0 : i32
    %c0_i32_1 = arith.constant 0 : i32
    return %c0_i32, %c0_i32_0 : i32, i32
  }
  func.func @transform_4(%arg0: i32) -> (i32, i32) {
    %c0_i32 = arith.constant 0 : i32
    %c0_i32_0 = arith.constant 0 : i32
    %c0_i32_1 = arith.constant 0 : i32
    return %c0_i32, %c0_i32_0 : i32, i32
  }
  func.func @transform_5(%arg0: i32) -> (i32, i32) {
    %c0_i32 = arith.constant 0 : i32
    %c0_i32_0 = arith.constant 0 : i32
    %c0_i32_1 = arith.constant 0 : i32
    return %c0_i32, %c0_i32_0 : i32, i32
  }
  func.func @transform_6(%arg0: i32) -> (i32, i32) {
    %c0_i32 = arith.constant 0 : i32
    %c0_i32_0 = arith.constant 0 : i32
    %c0_i32_1 = arith.constant 0 : i32
    return %c0_i32, %c0_i32_0 : i32, i32
  }
  func.func @transform_7(%arg0: i32) -> (i32, i32) {
    %c0_i32 = arith.constant 0 : i32
    %c0_i32_0 = arith.constant 0 : i32
    %c0_i32_1 = arith.constant 0 : i32
    return %c0_i32, %c0_i32_0 : i32, i32
  }
  func.func @transform_8(%arg0: i32) -> (i32, i32) {
    %c0_i32 = arith.constant 0 : i32
    %c0_i32_0 = arith.constant 0 : i32
    %c0_i32_1 = arith.constant 0 : i32
    return %c0_i32, %c0_i32_0 : i32, i32
  }
  func.func @transform_9(%arg0: i32) -> (i32, i32) {
    %c0_i32 = arith.constant 0 : i32
    %c0_i32_0 = arith.constant 0 : i32
    %c0_i32_1 = arith.constant 0 : i32
    return %c0_i32, %c0_i32_0 : i32, i32
  }
  func.func @transform_10(%arg0: i32) -> (i32, i32) {
    %c0_i32 = arith.constant 0 : i32
    %c0_i32_0 = arith.constant 0 : i32
    %c0_i32_1 = arith.constant 0 : i32
    return %c0_i32, %c0_i32_0 : i32, i32
  }
  func.func @transform_11(%arg0: i32) -> (i32, i32) {
    %c0_i32 = arith.constant 0 : i32
    %c0_i32_0 = arith.constant 0 : i32
    %c0_i32_1 = arith.constant 0 : i32
    return %c0_i32, %c0_i32_0 : i32, i32
  }
  func.func @transform_12(%arg0: i32) -> (i32, i32) {
    %c0_i32 = arith.constant 0 : i32
    %c0_i32_0 = arith.constant 0 : i32
    %c0_i32_1 = arith.constant 0 : i32
    return %c0_i32, %c0_i32_0 : i32, i32
  }
  func.func @transform_13(%arg0: i32) -> (i32, i32) {
    %c0_i32 = arith.constant 0 : i32
    %c0_i32_0 = arith.constant 0 : i32
    %c0_i32_1 = arith.constant 0 : i32
    return %c0_i32, %c0_i32_0 : i32, i32
  }
  func.func @transform_14(%arg0: i32) -> (i32, i32, i32) {
    %c0_i32 = arith.constant 0 : i32
    %c0_i32_0 = arith.constant 0 : i32
    %c0_i32_1 = arith.constant 0 : i32
    return %arg0, %c0_i32, %c0_i32_0 : i32, i32, i32
  }
}

</mosaic_0001>

<bundles_post_ra>
// kernel: roberta_classifier_forward.4
= control target key start
LH: loop header
LB: loop body
LE: loop exit
PB: predicated region body
PF: predicated region fallthrough
CT: control target
= control target key end

     0   :  { %s311_s12 = smov 0   ;;  %s341_s0 = inlined_call_operand.vmem [shape: f32[2,8,128], index: 0, kind: input, shape index: {}]   ;;  %s342_s1 = inlined_call_operand.vmem [shape: f32[1,128], index: 1, kind: input, shape index: {}]   ;;  %s343_s2 = inlined_call_operand.vmem [shape: f32[1,128], index: 2, kind: input, shape index: {}]   ;;  %s344_s3 = inlined_call_operand.vmem [shape: f32[2,8,128], index: 3, kind: output, shape index: {}]  }
   0x1 LB: > { %s258_s13 = sadd.s32 4294967295, %s288_s12   ;;  %p262_p0 = scmp.ge.s32.totalorder %s288_s12, 1  ;;  %s288_s12 = sphi %s311_s12, %s13_s12  }
   0x2   : > { %p136_p1 = scmp.lt.s32.totalorder %s288_s12, 3 }
   0x4   : > { %p137_p2 = pnand %p262_p0, %p136_p1 }
   0x5   : > { %p158_p3 = scmp.lt.s32.totalorder (!%p137_p2), %s258_s13, 1 }
   0x6   : > { %140 = sbr.rel (%p137_p2) target bundleno = 282 (0x11a), region = 32 }
   0xb   : > { %s346_s13 = smov (!%p158_p3, %s258_s13), 1  ;;  %v290_v1 = vmov 128.0   ;;  %v276_v21 = vld [vmem:[%s342_s1] ss:$0 sm:$0xff] }
   0xc   : > { %s263_s14 = sshll.u32 %s346_s13, 3  ;;  %278 = vrcp.f32 %v290_v1  ;;  %v277_v23 = vld [vmem:[%s343_s2] ss:$0 sm:$0xff] }
   0xd   : > { %s161_s17 = scalar_lea.vmem %s341_s0, %s263_s14  ;;  %s165_s24 = scalar_lea.vmem %s344_s3, %s263_s14 }
   0xe   : > { %v166_v0 = vld [vmem:[%s161_s17] sm:$0xff] }
   0xf   : > { %169 = vadd.xlane.f32.xlu0 %v166_v0 }
  0x12   : > { %v279_v2 = vpop.eup %278 }
  0x13   : > { %v172_v3 = vmul.f32 128.0, %v279_v2  ;;  %vm176_vm0 = vweird.f32 %v279_v2 }
  0x15   : > { %v173_v4 = vsub.f32 1.0, %v172_v3 }
  0x17   : > { %v174_v5 = vmul.f32 %v279_v2, %v173_v4 }
  0x19   : > { %v175_v6 = vadd.f32 %v279_v2, %v174_v5 }
  0x1b   : > { %v177_v7 = vsel %vm176_vm0, %v279_v2, %v175_v6 }
  0x82   : > { %v170_v8 = vpop.xlane.xlu0 %169 }
  0x83   : > { %v178_v9 = vmul.f32 %v177_v7, %v170_v8 }
  0x85   : > { %v179_v10 = vsub.f32 %v166_v0, %v178_v9 }
  0x87   : > { %v180_v11 = vmul.f32 %v179_v10, %v179_v10 }
  0x89   : > { %181 = vadd.xlane.f32.xlu0 %v180_v11 }
  0xfc   : > { %v182_v12 = vpop.xlane.xlu0 %181 }
  0xfd   : > { %v183_v13 = vmul.f32 %v182_v12, %v177_v7 }
  0xff   : > { %v184_v14 = vadd.f32 1e-05, %v183_v13 }
 0x101   : > { %280 = vrsqrt.f32 %v184_v14  ;;  %vm191_vm2 = vweird.f32 %v184_v14 }
 0x107   : > { %v281_v15 = vpop.eup %280 }
 0x108   : > { %v186_v16 = vmul.f32 %v281_v15, %v184_v14  ;;  %vm192_vm1 = vweird.f32 %v281_v15 }
 0x109   : > { %vm193_vm3 = vmor %vm191_vm2, %vm192_vm1 }
 0x10a   : > { %v187_v17 = vmul.f32 %v281_v15, %v186_v16 }
 0x10c   : > { %v188_v18 = vmul.f32 0.5, %v187_v17 }
 0x10e   : > { %v189_v19 = vsub.f32 1.5, %v188_v18 }
 0x110   : > { %v190_v20 = vmul.f32 %v281_v15, %v189_v19 }
 0x112   : > { %v194_v22 = vsel %vm193_vm3, %v281_v15, %v190_v20 }
 0x113   : > { %v195_v24 = vmul.f32 %v194_v22, %v179_v10 }
 0x115   : > { %v199_v25 = vmul.f32 %v276_v21, %v195_v24 }
 0x117   : > { %v203_v26 = vadd.f32 %v277_v23, %v199_v25 }
 0x119   : > { %204 = vst [vmem:[%s165_s24] sm:$0xff] %v203_v26 }
 0x11a PF: > { %s13_s12 = sadd.s32 1, %s288_s12  }
 0x11b   : > { %p10_p4 = scmp.ge.s32.totalorder %s13_s12, 4  }
 0x11d   :  { %12 = sbr.rel (!%p10_p4) target bundleno = 1 (0x1), region = 62 }

// kernel: roberta_classifier_forward.7
= control target key start
LH: loop header
LB: loop body
LE: loop exit
PB: predicated region body
PF: predicated region fallthrough
CT: control target
= control target key end

     0   :  { %8 = vsyncpa [#allocation3], 0  ;;  %s265_s0 = inlined_call_operand.vmem [shape: f32[2,128], index: 0, kind: input, shape index: {}]   ;;  %s266_s1 = inlined_call_operand.hbm [shape: bf16[128,128], index: 1, kind: input, shape index: {}]   ;;  %s267_s2 = inlined_call_operand.vmem [shape: f32[1,128], index: 2, kind: input, shape index: {}]   ;;  %s268_s3 = inlined_call_operand.hbm [shape: f32[2,128], index: 3, kind: output, shape index: {}]  }
   0x1   :  { %9 = vsyncpa [#allocation4], 0  ;;  %s16_s14 = sshll.u32 %s266_s1, 4  ;;  %s229_s15 = smov [#allocation2]   ;;  %s17_s14 = int_to_ptr.hbm [resolvable:$true] %s16_s14 }
   0x2   :  { %s18_s16 = sshll.u32 %s229_s15, 4  ;;  %s230_s17 = smov 64   ;;  %s19_s16 = int_to_ptr.vmem [resolvable:$true] %s18_s16 }
   0x3   :  { %s231_s18 = smov 4  }
   0x4   :  { %24 = dma.hbm_to_vmem [thread:$0]  %s17_s14, 1024, %s19_s16, [#allocation3], %s230_s17, %s230_s17, %s231_s18  }
   0x5   :  { %225 = dma.done.wait [#allocation3], 1024  }
   0x6   :  { %226 = vsyncadd [#allocation3], 4294966272  ;;  %v171_v0 = vld [vmem:[#allocation2 + $0x38] sm:$0xff]  ;;  %v170_v1 = vld [vmem:[#allocation2 + $0x30] sm:$0xff]  ;;  %s232_s22 = smov [#allocation5]   ;;  %s122_s26 = sshll.u32 %s268_s3, 4  ;;  %s123_s26 = int_to_ptr.hbm [resolvable:$true] %s122_s26 }
   0x7   :  { %101 = vmatpush.bf16.msra.mxu0 %v171_v0  ;;  %v169_v2 = vld [vmem:[#allocation2 + $0x28] sm:$0xff]  ;;  %v168_v3 = vld [vmem:[#allocation2 + $0x20] sm:$0xff]  ;;  %v167_v4 = vld [vmem:[#allocation2 + $0x18] sm:$0xff]  ;;  %s120_s23 = sshll.u32 %s232_s22, 4  ;;  %s121_s23 = int_to_ptr.vmem [resolvable:$true] %s120_s23 }
   0x8   :  { %v166_v5 = vld [vmem:[#allocation2 + $0x10] sm:$0xff]  ;;  %v165_v6 = vld [vmem:[#allocation2 + $0x8] sm:$0xff]  ;;  %v164_v7 = vld [vmem:[#allocation2] sm:$0xff] }
   0x9   :  { %v31_v8 = vld [vmem:[%s265_s0] sm:$0x3] }
   0xa   :  { %v32_v9 = vpack.c.bf16 %v31_v8, %v31_v8  ;;  %v176_v10 = vld [vmem:[%s267_s2] ss:$0 sm:$0xff] }
   0xb   :  { %102 = vmatpush.bf16.msra.mxu0 %v170_v1 }
   0xf   :  { %103 = vmatpush.bf16.msra.mxu0 %v169_v2 }
  0x13   :  { %104 = vmatpush.bf16.msra.mxu0 %v168_v3 }
  0x17   :  { %105 = vmatpush.bf16.msra.mxu0 %v167_v4 }
  0x1b   :  { %106 = vmatpush.bf16.msra.mxu0 %v166_v5 }
  0x1f   :  { %107 = vmatpush.bf16.msra.mxu0 %v165_v6 }
  0x23   :  { %108 = vmatpush.bf16.msra.mxu0 %v164_v7 }
  0x26   :  { %109 = vmatmul.bf16.vlgmr.msra.gmra.mxu0 %v32_v9 }
  0xa3   :  { %v110_v11 = vpop.f32.mrf.mxu0 }
  0xa4   :  { %v111_v12 = vadd.f32 %v176_v10, %v110_v11 }
  0xa6   :  { %114 = vst [vmem:[#allocation5] sm:$0x3] %v111_v12 }
  0xa7   :  { %125 = dma.vmem_to_hbm [thread:$0]  %s121_s23, 32, %s123_s26, [#allocation4]  }
  0xab   :  { %v112_v13 = vpop.f32.mrf.mxu0 }
  0xac   :  { %227 = dma.done.wait [#allocation4], 32  }
  0xad   :  { %228 = vsyncadd [#allocation4], 4294967264 }
  0xae   :  { %130 = vsyncpa [#allocation3], 1 }
  0xaf   :  { %131 = vsyncpa [#allocation4], 1 }

// kernel: roberta_classifier_forward.6
= control target key start
LH: loop header
LB: loop body
LE: loop exit
PB: predicated region body
PF: predicated region fallthrough
CT: control target
= control target key end

     0   :  { %s2542_s0 = inlined_call_operand.vmem [shape: f32[2,8,128], index: 0, kind: input, shape index: {}]   ;;  %s2543_s1 = inlined_call_operand.vmem [shape: f32[2,1,8], index: 1, kind: input, shape index: {}]   ;;  %s2544_s2 = inlined_call_operand.vmem [shape: bf16[128,384], index: 2, kind: input, shape index: {}]   ;;  %s2545_s3 = inlined_call_operand.vmem [shape: f32[1,384], index: 3, kind: input, shape index: {}]   ;;  %s2546_s4 = inlined_call_operand.hbm [shape: bf16[128,128], index: 4, kind: input, shape index: {}]   ;;  %s2547_s5 = inlined_call_operand.vmem [shape: f32[1,128], index: 5, kind: input, shape index: {}]   ;;  %s2548_s6 = inlined_call_operand.vmem [shape: f32[1,128], index: 6, kind: input, shape index: {}]   ;;  %s2549_s7 = inlined_call_operand.vmem [shape: f32[1,128], index: 7, kind: input, shape index: {}]   ;;  %s2550_s8 = inlined_call_operand.hbm [shape: bf16[128,256], index: 8, kind: input, shape index: {}]   ;;  %s2551_s9 = inlined_call_operand.vmem [shape: f32[1,256], index: 9, kind: input, shape index: {}]   ;;  %s2552_s10 = inlined_call_operand.hbm [shape: bf16[256,128], index: 10, kind: input, shape index: {}]   ;;  %s2553_s11 = inlined_call_operand.vmem [shape: f32[1,128], index: 11, kind: input, shape index: {}]   ;;  %s2554_s12 = inlined_call_operand.vmem [shape: f32[1,128], index: 12, kind: input, shape index: {}]   ;;  %s2555_s13 = inlined_call_operand.vmem [shape: f32[1,128], index: 13, kind: input, shape index: {}]   ;;  %s2556_s14 = inlined_call_operand.vmem [shape: f32[2,8,128], index: 14, kind: output, shape index: {}]  }
   0x1   :  { %2557 = sst [smem:[#allocation9_spill]] %s2546_s4 }
   0x2   :  { %2558 = sst [smem:[#allocation10_spill]] %s2550_s8 }
   0x3   :  { %19 = vsyncpa [#allocation3], 0 }
   0x4   :  { %20 = vsyncpa [#allocation5], 0  ;;  %s2239_s29 = smov 0  }
   0x5 LB: > { %s2559_s8 = sld [smem:[#allocation10_spill]]  ;;  %s2248_s17 = sadd.s32 4294967295, %s2151_s29   ;;  %s2151_s29 = sphi %s2239_s29, %s26_s29  }
   0x6   : > { %p1618_p0 = scmp.ge.s32.totalorder %s2151_s29, 1  ;;  %p361_p1 = scmp.lt.s32.totalorder %s2151_s29, 3 }
   0x7   : > { %p1989_p2 = scmp.eq.s32.totalorder %s2248_s17, 0  ;;  %s2153_s19 = smov [#allocation4]  }
   0x8   : > { %p2253_p3 = pnand %p1618_p0, %p361_p1  ;;  %s403_s20 = sshll.u32 %s2153_s19, 4  ;;  %s404_s20 = int_to_ptr.vmem [resolvable:$true] %s403_s20 }
   0x9   : > { %s2561_s4 = sld [smem:[#allocation9_spill]]  ;;  %s2154_s25 = smov [#allocation2]  }
   0xa   : > { %p1979_p4 = pneg %p2253_p3  ;;  %s380_s26 = sshll.u32 %s2154_s25, 4  ;;  %s381_s26 = int_to_ptr.vmem [resolvable:$true] %s380_s26 }
   0xb   : > { %s401_s16 = sshll.u32 %s2559_s8, 4  ;;  %s2155_s27 = smov 128   ;;  %s402_s16 = int_to_ptr.hbm [resolvable:$true] %s401_s16 }
   0xc   : > { %p2264_p5 = pnand %p1989_p2, %p1979_p4  ;;  %s2156_s28 = smov 8  }
   0xd   : > { %s418_s19 = sshll.u32 %s2552_s10, 4  ;;  %s2157_s21 = smov 64   ;;  %s419_s19 = int_to_ptr.hbm [resolvable:$true] %s418_s19 }
   0xe   : > { %1985 = dma.hbm_to_vmem [thread:$0]  (!%p2264_p5), %s402_s16, 2048, %s404_s20, [#allocation5], %s2155_s27, %s2155_s27, %s2156_s28  }
   0xf   : > { %s378_s23 = sshll.u32 %s2561_s4, 4  ;;  %s2158_s22 = smov 4   ;;  %s379_s23 = int_to_ptr.hbm [resolvable:$true] %s378_s23 }
  0x10   : > { %1982 = dma.hbm_to_vmem [thread:$0]  (!%p2264_p5), %s379_s23, 1024, %s381_s26, [#allocation3], %s2157_s21, %s2157_s21, %s2158_s22  }
  0x11   : > { %s2159_s4 = smov [#allocation6]   ;;  %458 = sbr.rel (%p2253_p3) target bundleno = 2102 (0x836), region = 76 }
  0x12   : > { %s420_s8 = sshll.u32 %s2159_s4, 4  ;;  %s421_s8 = int_to_ptr.vmem [resolvable:$true] %s420_s8 }
  0x13   : > { %1988 = dma.hbm_to_vmem [thread:$0]  (!%p2264_p5), %s419_s19, 2048, %s421_s8, [#allocation5], %s2157_s21, %s2157_s21, %s2158_s22  }
  0x16   : > { %2142 = dma.done.wait (%p1989_p2), [#allocation3], 1024  }
  0x17   : > { %2144 = vsyncadd (%p1989_p2), [#allocation3], 4294966272 }
  0x18   : > { %2146 = dma.done.wait (%p1989_p2), [#allocation5], 4096  }
  0x19   : > { %2148 = vsyncadd (%p1989_p2), [#allocation5], 4294963200  ;;  %v1715_v0 = vld [vmem:[%s2544_s2 + $0xa8] sm:$0xf]  ;;  %v1925_v1 = vld [vmem:[%s2544_s2 + $0xb0] sm:$0xf0] }
  0x1a   : > { %v1924_v2 = vld [vmem:[%s2544_s2 + $0xac] sm:$0xf]  ;;  %v1716_v3 = vor.u32 %v1925_v1, %v1715_v0  ;;  %v1717_v4 = vld [vmem:[%s2544_s2 + $0xb4] sm:$0xf0]  ;;  %v1703_v5 = vld [vmem:[%s2544_s2 + $0x90] sm:$0xf] }
  0x1b   : > { %v1922_v6 = vld [vmem:[%s2544_s2 + $0x98] sm:$0xf0]  ;;  %v1720_v7 = vor.u32 %v1924_v2, %v1717_v4  ;;  %v1921_v8 = vld [vmem:[%s2544_s2 + $0x94] sm:$0xf]  ;;  %v1705_v9 = vld [vmem:[%s2544_s2 + $0x9c] sm:$0xf0] }
  0x1c   : > { %699 = vmatpush.bf16.msra.mxu0 %v1716_v3  ;;  %v1704_v10 = vor.u32 %v1922_v6, %v1703_v5  ;;  %v1708_v11 = vor.u32 %v1921_v8, %v1705_v9  ;;  %v1691_v12 = vld [vmem:[%s2544_s2 + $0x78] sm:$0xf]  ;;  %v1919_v13 = vld [vmem:[%s2544_s2 + $0x80] sm:$0xf0]  ;;  %v1918_v14 = vld [vmem:[%s2544_s2 + $0x7c] sm:$0xf] }
  0x1d   : > { %712 = vmatpush.bf16.msra.mxu1 %v1720_v7  ;;  %v1693_v15 = vld [vmem:[%s2544_s2 + $0x84] sm:$0xf0]  ;;  %v1692_v16 = vor.u32 %v1919_v13, %v1691_v12  ;;  %v1679_v18 = vld [vmem:[%s2544_s2 + $0x60] sm:$0xf]  ;;  %v1916_v19 = vld [vmem:[%s2544_s2 + $0x68] sm:$0xf0] }
  0x1e   : > { %v1696_v17 = vor.u32 %v1918_v14, %v1693_v15  ;;  %v1915_v20 = vld [vmem:[%s2544_s2 + $0x64] sm:$0xf]  ;;  %v1681_v21 = vld [vmem:[%s2544_s2 + $0x6c] sm:$0xf0]  ;;  %p516_p6 = scmp.lt.s32.totalorder %s2248_s17, 1  ;;  %v1680_v22 = vor.u32 %v1916_v19, %v1679_v18  ;;  %vm738_vm0 = vcmask 261120  }
  0x1f   : > { %v1723_v23 = vld [vmem:[%s2544_s2 + $0xb0] sm:$0xf]  ;;  %v1926_v24 = vld [vmem:[%s2544_s2 + $0xb8] sm:$0xf0]  ;;  %v1711_v25 = vld [vmem:[%s2544_s2 + $0x98] sm:$0xf]  ;;  %v1684_v26 = vor.u32 %v1915_v20, %v1681_v21 }
  0x20   : > { %700 = vmatpush.bf16.msra.mxu0 %v1704_v10  ;;  %v1667_v27 = vld [vmem:[%s2544_s2 + $0x48] sm:$0xf]  ;;  %v1913_v28 = vld [vmem:[%s2544_s2 + $0x50] sm:$0xf0]  ;;  %v1724_v29 = vor.u32 %v1926_v24, %v1723_v23  ;;  %v1923_v30 = vld [vmem:[%s2544_s2 + $0xa0] sm:$0xf0] }
  0x21   : > { %713 = vmatpush.bf16.msra.mxu1 %v1708_v11  ;;  %v1912_v31 = vld [vmem:[%s2544_s2 + $0x4c] sm:$0xf]  ;;  %v1669_v32 = vld [vmem:[%s2544_s2 + $0x54] sm:$0xf0]  ;;  %s2564_s17 = smov (!%p516_p6, %s2248_s17), 1  ;;  %v1712_v33 = vor.u32 %v1923_v30, %v1711_v25  ;;  %v1668_v34 = vor.u32 %v1913_v28, %v1667_v27  ;;  %s2160_s25 = smov 64  }
  0x22   : > { %725 = vmatpush.bf16.msra.mxu2 %v1724_v29  ;;  %v1655_v35 = vld [vmem:[%s2544_s2 + $0x30] sm:$0xf]  ;;  %v1699_v36 = vld [vmem:[%s2544_s2 + $0x80] sm:$0xf]  ;;  %v1920_v37 = vld [vmem:[%s2544_s2 + $0x88] sm:$0xf0]  ;;  %v1672_v38 = vor.u32 %v1912_v31, %v1669_v32  ;;  %s522_s15 = scalar_lea.vmem %s2543_s1, %s2564_s17 }
  0x23   : > { %v1910_v39 = vld [vmem:[%s2544_s2 + $0x38] sm:$0xf0]  ;;  %v1909_v40 = vld [vmem:[%s2544_s2 + $0x34] sm:$0xf]  ;;  %v1657_v41 = vld [vmem:[%s2544_s2 + $0x3c] sm:$0xf0]  ;;  %v1700_v42 = vor.u32 %v1920_v37, %v1699_v36 }
  0x24   : > { %701 = vmatpush.bf16.msra.mxu0 %v1692_v16  ;;  %v1656_v43 = vor.u32 %v1910_v39, %v1655_v35  ;;  %v1687_v44 = vld [vmem:[%s2544_s2 + $0x68] sm:$0xf]  ;;  %v1917_v45 = vld [vmem:[%s2544_s2 + $0x70] sm:$0xf0]  ;;  %v1660_v46 = vor.u32 %v1909_v40, %v1657_v41  ;;  %v1643_v47 = vld [vmem:[%s2544_s2 + $0x18] sm:$0xf] }
  0x25   : > { %714 = vmatpush.bf16.msra.mxu1 %v1696_v17  ;;  %v1907_v48 = vld [vmem:[%s2544_s2 + $0x20] sm:$0xf0]  ;;  %v1906_v49 = vld [vmem:[%s2544_s2 + $0x1c] sm:$0xf]  ;;  %v1645_v50 = vld [vmem:[%s2544_s2 + $0x24] sm:$0xf0]  ;;  %v1688_v51 = vor.u32 %v1917_v45, %v1687_v44 }
  0x26   : > { %726 = vmatpush.bf16.msra.mxu2 %v1712_v33  ;;  %s1627_s26 = sshll.u32 %s2564_s17, 3  ;;  %v1644_v52 = vor.u32 %v1907_v48, %v1643_v47  ;;  %v1675_v53 = vld [vmem:[%s2544_s2 + $0x50] sm:$0xf]  ;;  %v1914_v54 = vld [vmem:[%s2544_s2 + $0x58] sm:$0xf0]  ;;  %v1648_v55 = vor.u32 %v1906_v49, %v1645_v50  ;;  %s2161_s27 = smov 96  }
  0x27   : > { %v1631_v56 = vld [vmem:[%s2544_s2] sm:$0xf]  ;;  %v1904_v57 = vld [vmem:[%s2544_s2 + $0x8] sm:$0xf0]  ;;  %s519_s20 = scalar_lea.vmem %s2542_s0, %s1627_s26  ;;  %v1903_v58 = vld [vmem:[%s2544_s2 + $0x4] sm:$0xf]  ;;  %v1676_v60 = vor.u32 %v1914_v54, %v1675_v53  ;;  %s526_s22 = scalar_lea.vmem %s2556_s14, %s1627_s26 }
  0x28   : > { %702 = vmatpush.bf16.msra.mxu0 %v1680_v22  ;;  %v1633_v59 = vld [vmem:[%s2544_s2 + $0xc] sm:$0xf0]  ;;  %v1632_v61 = vor.u32 %v1904_v57, %v1631_v56  ;;  %v2425_v62 = vld [vmem:[%s519_s20] sm:$0xff]  ;;  %v1663_v63 = vld [vmem:[%s2544_s2 + $0x38] sm:$0xf]  ;;  %s2162_s19 = smov 32  }
  0x29   : > { %715 = vmatpush.bf16.msra.mxu1 %v1684_v26  ;;  %v1911_v0 = vld [vmem:[%s2544_s2 + $0x40] sm:$0xf0]  ;;  %v1636_v1 = vor.u32 %v1903_v58, %v1633_v59  ;;  %v530_v2 = vpack.c.bf16 %v2425_v62, %v2425_v62  ;;  %v1651_v4 = vld [vmem:[%s2544_s2 + $0x20] sm:$0xf]  ;;  %v1908_v5 = vld [vmem:[%s2544_s2 + $0x28] sm:$0xf0] }
  0x2a   : > { %727 = vmatpush.bf16.msra.mxu2 %v1700_v42  ;;  %v1664_v3 = vor.u32 %v1911_v0, %v1663_v63  ;;  %v1652_v6 = vor.u32 %v1908_v5, %v1651_v4  ;;  %v1639_v7 = vld [vmem:[%s2544_s2 + $0x8] sm:$0xf]  ;;  %v1905_v8 = vld [vmem:[%s2544_s2 + $0x10] sm:$0xf0]  ;;  %v563_v10 = vld [vmem:[%s2545_s3] sm:$0x7] }
  0x2b   : > { %v1640_v9 = vor.u32 %v1905_v8, %v1639_v7  ;;  %v566_v11 = vperm.slane %v563_v10, 1  ;;  %v565_v12 = vperm.slane %v563_v10, 0  ;;  %v567_v19 = vperm.slane %v563_v10, 2  ;;  %v2014_v26 = vld [vmem:[%s522_s15] ss:$0 sm:$0xff] }
  0x2c   : > { %703 = vmatpush.bf16.msra.mxu0 %v1668_v34  ;;  %vm770_vm1 = vcmask 64512  }
  0x2d   : > { %716 = vmatpush.bf16.msra.mxu1 %v1672_v38 }
  0x2e   : > { %728 = vmatpush.bf16.msra.mxu2 %v1688_v51  ;;  %v1928_v51 = vld [vmem:[#allocation2 + $0x8] sm:$0xff] }
  0x30   : > { %704 = vmatpush.bf16.msra.mxu0 %v1656_v43 }
  0x31   : > { %717 = vmatpush.bf16.msra.mxu1 %v1660_v46 }
  0x32   : > { %729 = vmatpush.bf16.msra.mxu2 %v1676_v60 }
  0x34   : > { %705 = vmatpush.bf16.msra.mxu0 %v1644_v52  ;;  %v1927_v52 = vld [vmem:[#allocation2] sm:$0xff] }
  0x35   : > { %718 = vmatpush.bf16.msra.mxu1 %v1648_v55 }
  0x36   : > { %730 = vmatpush.bf16.msra.mxu2 %v1664_v3 }
  0x38   : > { %706 = vmatpush.bf16.msra.mxu0 %v1632_v61 }
  0x39   : > { %719 = vmatpush.bf16.msra.mxu1 %v1636_v1 }
  0x3a   : > { %731 = vmatpush.bf16.msra.mxu2 %v1652_v6 }
  0x3b   : > { %707 = vmatmul.bf16.vlgmr.msra.gmra.mxu0 %v530_v2 }
  0x3c   : > { %720 = vmatmul.bf16.vlgmr.msra.gmra.mxu1 %v530_v2  ;;  %932 = vmatpush.bf16.msrb.mxu0 %v1928_v51  ;;  %v1949_v51 = vld [vmem:[#allocation4 + $0x74] sm:$0xf] }
  0x3e   : > { %732 = vmatpush.bf16.msra.mxu2 %v1640_v9 }
  0x40   : > { %933 = vmatpush.bf16.msrb.mxu0 %v1927_v52 }
  0x41   : > { %733 = vmatmul.bf16.vlgmr.msra.gmra.mxu2 %v530_v2 }
  0xb8   : > { %v708_v13 = vpop.f32.mrf.mxu0 }
  0xb9   : > { %v721_v14 = vpop.f32.mrf.mxu1  ;;  %v709_v16 = vadd.f32 %v708_v13, %v565_v12 }
  0xba   : > { %v722_v15 = vadd.f32 %v721_v14, %v566_v11 }
  0xbc   : > { %941 = vrot.lane.b32.xlu2 %v722_v15, %s2160_s25  ;;  %812 = vrot.lane.b32.xlu1 %v722_v15, %s2161_s27 }
  0xbd   : > { %1725 = vmatpush.xpose.msk.msra.mxu3 %vm738_vm0, %v722_v15 }
  0xc0   : > { %1726 = vmatmul.msk.f32.vlgmr.msra.gmra.mxu3 %vm738_vm0, %v709_v16  ;;  %v710_v17 = vpop.f32.mrf.mxu0 }
  0xc1   : > { %v723_v18 = vpop.f32.mrf.mxu1 }
  0xc2   : > { %v1930_v18 = vld [vmem:[#allocation2 + $0x18] sm:$0xff] }
  0xc4   : > { %939 = vrot.lane.b32.xlu2 %v709_v16, %s2160_s25  ;;  %810 = vrot.lane.b32.xlu1 %v709_v16, %s2161_s27  ;;  %v734_v20 = vpop.f32.mrf.mxu2 }
  0xc5   : > { %v2461_v21 = vadd.f32 %v734_v20, %v567_v19 }
  0xc7   : > { %800 = vmatpush.msrb.mxu3 %v2461_v21 }
  0xcc   : > { %1040 = vrot.lane.b32.xlu1 %v709_v16, %s2162_s19  ;;  %v736_v22 = vpop.f32.mrf.mxu2 }
 0x116   : > { %v942_v23 = vpop.permute.xlu2 %941 }
 0x117   : > { %1749 = vmatpush.xpose.msk.msrb.mxu1 %vm738_vm0, %v942_v23 }
 0x11e   : > { %v940_v24 = vpop.permute.xlu2 %939 }
 0x11f   : > { %1750 = vmatmul.msk.f32.vlgmr.msrb.gmra.mxu1 %vm738_vm0, %v940_v24 }
 0x12e   : > { %v813_v25 = vpop.permute.xlu1 %812 }
 0x12f   : > { %1728 = vmatpush.xpose.msk.msra.mxu3 %vm738_vm0, %v813_v25 }
 0x136   : > { %v811_v40 = vpop.permute.xlu1 %810 }
 0x13e   : > { %v1041_v41 = vpop.permute.xlu1 %1040 }
 0x143   : > { %v762_v27 = vpop.f32.mrf.mxu3 }
 0x144   : > { %v765_v28 = vmul.f32 0.17677669, %v762_v27  ;;  %v1934_v27 = vld [vmem:[#allocation2 + $0x38] sm:$0xff] }
 0x145   : > { %1133 = vmatpush.bf16.msra.mxu0 %v1934_v27  ;;  %v1939_v27 = vld [vmem:[#allocation4 + $0x24] sm:$0xf] }
 0x146   : > { %v769_v29 = vadd.f32 %v2014_v26, %v765_v28  ;;  %v1933_v28 = vld [vmem:[#allocation2 + $0x30] sm:$0xff] }
 0x148   : > { %v771_v30 = vsel %vm770_vm1, %v769_v29, -inf }
 0x149   : > { %772 = vmax.xlane.f32.xlu0 %v771_v30  ;;  %1134 = vmatpush.bf16.msra.mxu0 %v1933_v28 }
 0x19c   : > { %v964_v31 = vpop.f32.mrf.mxu1 }
 0x19d   : > { %v967_v32 = vmul.f32 0.17677669, %v964_v31 }
 0x19f   : > { %v968_v33 = vadd.f32 %v2014_v26, %v967_v32 }
 0x1a1   : > { %v969_v34 = vsel %vm770_vm1, %v968_v33, -inf }
 0x1a2   : > { %970 = vmax.xlane.f32.xlu1 %v969_v34 }
 0x1bc   : > { %v773_v35 = vpop.xlane.xlu0 %772 }
 0x1bd   : > { %v774_v36 = vsub.f32 %v769_v29, %v773_v35  ;;  %v1931_v29 = vld [vmem:[#allocation2 + $0x20] sm:$0xff] }
 0x1bf   : > { %v775_v37 = vmul.f32 1.442695, %v774_v36 }
 0x1c1   : > { %2021 = vpow2.f32 %v775_v37 }
 0x1c7   : > { %v2022_v38 = vpop.eup %2021 }
 0x1c8   : > { %v777_v39 = vsel %vm770_vm1, %v2022_v38, 0.0 }
 0x1c9   : > { %778 = vadd.xlane.f32.xlu0 %v777_v39 }
 0x1dd   : > { %1042 = vrot.lane.b32.xlu0 %v722_v15, %s2162_s19 }
 0x215   : > { %v971_v42 = vpop.xlane.xlu1 %970 }
 0x216   : > { %v972_v43 = vsub.f32 %v968_v33, %v971_v42 }
 0x218   : > { %v973_v44 = vmul.f32 1.442695, %v972_v43  ;;  %v2015_v43 = vld [vmem:[%s2547_s5] ss:$0 sm:$0xff] }
 0x21a   : > { %2023 = vpow2.f32 %v973_v44 }
 0x220   : > { %v2024_v45 = vpop.eup %2023 }
 0x221   : > { %v975_v46 = vsel %vm770_vm1, %v2024_v45, 0.0 }
 0x222   : > { %976 = vadd.xlane.f32.xlu1 %v975_v46 }
 0x23c   : > { %v779_v47 = vpop.xlane.xlu0 %778 }
 0x23d   : > { %2025 = vrcp.f32 %v779_v47 }
 0x243   : > { %v2026_v48 = vpop.eup %2025 }
 0x244   : > { %v781_v49 = vmul.f32 %v2026_v48, %v2022_v38  ;;  %v2163_v48 = vmov 128.0  }
 0x246   : > { %1727 = vmatmul.msk.f32.vlgmr.msrb.gmra.mxu3 %vm770_vm1, %v781_v49  ;;  %v1831_v49 = vld [vmem:[#allocation4 + $0x70] sm:$0xf] }
 0x24e   : > { %1729 = vmatmul.msk.f32.vlgmr.msra.gmra.mxu3 %vm738_vm0, %v811_v40 }
 0x24f   : > { %v1043_v50 = vpop.permute.xlu0 %1042 }
 0x250   : > { %1761 = vmatpush.xpose.msk.msra.mxu1 %vm738_vm0, %v1043_v50  ;;  %v1950_v50 = vld [vmem:[#allocation4 + $0x74] sm:$0xf0] }
 0x251   : > { %v1832_v52 = vor.u32 %v1950_v50, %v1831_v49 }
 0x253   : > { %1762 = vmatmul.msk.f32.vlgmr.msra.gmra.mxu1 %vm738_vm0, %v1041_v41 }
 0x295   : > { %v977_v7 = vpop.xlane.xlu1 %976 }
 0x2c9   : > { %v802_v53 = vpop.f32.mrf.mxu3 }
 0x2ca   : > { %v805_v54 = vpack.c.bf16 %v802_v53, %v802_v53  ;;  %v1833_v53 = vld [vmem:[#allocation4 + $0x78] sm:$0xf0] }
 0x2cc   : > { %1748 = vmatmul.msk.bf16.vlgmr.msrb.gmra.mxu0 %vm738_vm0, %v805_v54  ;;  %v1836_v54 = vor.u32 %v1949_v51, %v1833_v53  ;;  %v2016_v53 = vld [vmem:[%s2548_s6] ss:$0 sm:$0xff] }
 0x2ce   : > { %1300 = vmatpush.bf16.msrb.mxu1 %v1836_v54 }
 0x2d0   : > { %v1065_v55 = vpop.f32.mrf.mxu1 }
 0x2d1   : > { %v1068_v56 = vmul.f32 0.17677669, %v1065_v55  ;;  %v835_v57 = vpop.f32.mrf.mxu3 }
 0x2d2   : > { %v838_v58 = vmul.f32 0.17677669, %v835_v57 }
 0x2d3   : > { %v1069_v59 = vadd.f32 %v2014_v26, %v1068_v56 }
 0x2d4   : > { %v839_v60 = vadd.f32 %v2014_v26, %v838_v58  ;;  %v1929_v26 = vld [vmem:[#allocation2 + $0x10] sm:$0xff] }
 0x2d5   : > { %v1070_v61 = vsel %vm770_vm1, %v1069_v59, -inf }
 0x2d6   : > { %1071 = vmax.xlane.f32.xlu0 %v1070_v61  ;;  %v840_v63 = vsel %vm770_vm1, %v839_v60, -inf }
 0x2d7   : > { %841 = vmax.xlane.f32.xlu2 %v840_v63 }
 0x2ea   : > { %980 = vrot.lane.b32.xlu0 %v2461_v21, %s2160_s25 }
 0x349   : > { %v2481_v0 = vpop.f32.mrf.mxu0  ;;  %v1072_v1 = vpop.xlane.xlu0 %1071 }
 0x34a   : > { %v1073_v2 = vsub.f32 %v1069_v59, %v1072_v1  ;;  %v842_v3 = vpop.xlane.xlu2 %841  ;;  %v1823_v1 = vld [vmem:[#allocation4 + $0x60] sm:$0xf] }
 0x34b   : > { %v843_v4 = vsub.f32 %v839_v60, %v842_v3  ;;  %v1947_v3 = vld [vmem:[#allocation4 + $0x64] sm:$0xf] }
 0x34c   : > { %v1074_v5 = vmul.f32 1.442695, %v1073_v2  ;;  %v1948_v2 = vld [vmem:[#allocation4 + $0x64] sm:$0xf0] }
 0x34d   : > { %v844_v6 = vmul.f32 1.442695, %v843_v4  ;;  %v1824_v4 = vor.u32 %v1948_v2, %v1823_v1  ;;  %v1957_v1 = vld [vmem:[#allocation6 + $0x30] sm:$0xff]  ;;  %v1956_v2 = vld [vmem:[#allocation6 + $0x28] sm:$0xff] }
 0x34e   : > { %2027 = vpow2.f32 %v1074_v5  ;;  %v1825_v5 = vld [vmem:[#allocation4 + $0x68] sm:$0xf0] }
 0x34f   : > { %2029 = vpow2.f32 %v844_v6  ;;  %v1828_v6 = vor.u32 %v1947_v3, %v1825_v5  ;;  %v1962_v3 = vld [vmem:[#allocation6 + $0x58] sm:$0xff]  ;;  %v1961_v5 = vld [vmem:[#allocation6 + $0x50] sm:$0xff] }
 0x350   : > { %2031 = vrcp.f32 %v977_v7  ;;  %v1815_v7 = vld [vmem:[#allocation4 + $0x50] sm:$0xf] }
 0x351   : > { %v937_v8 = vpop.f32.mrf.mxu0  ;;  %1301 = vmatpush.bf16.msrb.mxu1 %v1828_v6  ;;  %v1954_v6 = vld [vmem:[#allocation6 + $0x18] sm:$0xff] }
 0x352   : > { %v1946_v8 = vld [vmem:[#allocation4 + $0x54] sm:$0xf0] }
 0x354   : > { %v2028_v9 = vpop.eup %2027 }
 0x355   : > { %v2030_v10 = vpop.eup %2029  ;;  %v1076_v11 = vsel %vm770_vm1, %v2028_v9, 0.0 }
 0x356   : > { %1077 = vadd.xlane.f32.xlu1 %v1076_v11  ;;  %v846_v12 = vsel %vm770_vm1, %v2030_v10, 0.0  ;;  %v2032_v13 = vpop.eup %2031  ;;  %v1817_v11 = vld [vmem:[#allocation4 + $0x58] sm:$0xf0] }
 0x357   : > { %847 = vadd.xlane.f32.xlu2 %v846_v12  ;;  %v979_v15 = vmul.f32 %v2032_v13, %v2024_v45  ;;  %v1807_v13 = vld [vmem:[#allocation4 + $0x40] sm:$0xf] }
 0x35c   : > { %v981_v14 = vpop.permute.xlu0 %980 }
 0x35d   : > { %1001 = vmatpush.msrb.mxu2 %v981_v14  ;;  %v1944_v14 = vld [vmem:[#allocation4 + $0x44] sm:$0xf0] }
 0x35e   : > { %1751 = vmatmul.msk.f32.vlgmr.msrb.gmra.mxu2 %vm770_vm1, %v979_v15  ;;  %v1943_v15 = vld [vmem:[#allocation4 + $0x44] sm:$0xf] }
 0x36f   : > { %852 = vrot.lane.b32.xlu2 %v2461_v21, %s2161_s27  ;;  %1081 = vrot.lane.b32.xlu1 %v2461_v21, %s2162_s19  ;;  %v1932_v21 = vld [vmem:[#allocation2 + $0x28] sm:$0xff] }
 0x3c9   : > { %v1078_v22 = vpop.xlane.xlu1 %1077 }
 0x3ca   : > { %v848_v16 = vpop.xlane.xlu2 %847 }
 0x3cb   : > { %2033 = vrcp.f32 %v848_v16  ;;  %v1808_v16 = vor.u32 %v1944_v14, %v1807_v13 }
 0x3cc   : > { %2035 = vrcp.f32 %v1078_v22  ;;  %v1941_v22 = vld [vmem:[#allocation4 + $0x34] sm:$0xf] }
 0x3cd   : > { %2037 = vrcp.f32 %v2163_v48 }
 0x3d1   : > { %v2034_v17 = vpop.eup %2033 }
 0x3d2   : > { %v850_v19 = vmul.f32 %v2034_v17, %v2030_v10  ;;  %v853_v20 = vpop.permute.xlu2 %852  ;;  %v2036_v23 = vpop.eup %2035  ;;  %v1816_v10 = vor.u32 %v1946_v8, %v1815_v7  ;;  %v1809_v17 = vld [vmem:[#allocation4 + $0x48] sm:$0xf0]  ;;  %v1953_v8 = vld [vmem:[#allocation6 + $0x10] sm:$0xff] }
 0x3d3   : > { %873 = vmatpush.msrb.mxu3 %v853_v20  ;;  %v1080_v24 = vmul.f32 %v2036_v23, %v2028_v9  ;;  %v2038_v55 = vpop.eup %2037  ;;  %v1945_v9 = vld [vmem:[#allocation4 + $0x54] sm:$0xf]  ;;  %v1942_v20 = vld [vmem:[#allocation4 + $0x34] sm:$0xf0]  ;;  %v1960_v7 = vld [vmem:[#allocation6 + $0x48] sm:$0xff] }
 0x3d4   : > { %1730 = vmatmul.msk.f32.vlgmr.msrb.gmra.mxu3 %vm770_vm1, %v850_v19  ;;  %v1152_v56 = vmul.f32 128.0, %v2038_v55  ;;  %vm1156_vm2 = vweird.f32 %v2038_v55  ;;  %v1820_v12 = vor.u32 %v1945_v9, %v1817_v11  ;;  %v1799_v19 = vld [vmem:[#allocation4 + $0x30] sm:$0xf]  ;;  %v1959_v9 = vld [vmem:[#allocation6 + $0x40] sm:$0xff] }
 0x3d5   : > { %904 = vmatpush.bf16.msra.mxu3 %v1930_v18  ;;  %v1812_v18 = vor.u32 %v1943_v15, %v1809_v17  ;;  %v1800_v23 = vor.u32 %v1942_v20, %v1799_v19  ;;  %v1201_v11 = vld [vmem:[%s2551_s9] sm:$0x3] }
 0x3d6   : > { %v1153_v57 = vsub.f32 1.0, %v1152_v56  ;;  %1302 = vmatpush.bf16.msrb.mxu1 %v1820_v12  ;;  %v2017_v56 = vld [vmem:[%s2549_s7] ss:$0 sm:$0xff]  ;;  %v1204_v13 = vperm.slane %v1201_v11, 1  ;;  %v1203_v17 = vperm.slane %v1201_v11, 0 }
 0x3d7   : > { %v1951_v12 = vld [vmem:[#allocation6] sm:$0xff] }
 0x3d8   : > { %v1154_v58 = vmul.f32 %v2038_v55, %v1153_v57 }
 0x3d9   : > { %905 = vmatpush.bf16.msra.mxu3 %v1929_v26  ;;  %v1791_v26 = vld [vmem:[#allocation4 + $0x20] sm:$0xf] }
 0x3da   : > { %v1155_v59 = vadd.f32 %v2038_v55, %v1154_v58  ;;  %1303 = vmatpush.bf16.msrb.mxu1 %v1812_v18 }
 0x3dc   : > { %v2500_v60 = vsel %vm1156_vm2, %v2038_v55, %v1155_v59 }
 0x3dd   : > { %1032 = vmatpush.bf16.msrb.mxu3 %v1932_v21  ;;  %v1940_v21 = vld [vmem:[#allocation4 + $0x24] sm:$0xf0] }
 0x3de   : > { %v1792_v28 = vor.u32 %v1940_v21, %v1791_v26 }
 0x3e1   : > { %v1082_v25 = vpop.permute.xlu1 %1081  ;;  %1033 = vmatpush.bf16.msrb.mxu3 %v1931_v29  ;;  %v1003_v32 = vpop.f32.mrf.mxu2  ;;  %v1793_v29 = vld [vmem:[#allocation4 + $0x28] sm:$0xf0] }
 0x3e2   : > { %1102 = vmatpush.msra.mxu2 %v1082_v25  ;;  %v1006_v35 = vpack.c.bf16 %v1003_v32, %v1003_v32  ;;  %v1938_v32 = vld [vmem:[#allocation4 + $0x14] sm:$0xf0] }
 0x3e3   : > { %1763 = vmatmul.msk.f32.vlgmr.msra.gmra.mxu2 %vm770_vm1, %v1080_v24  ;;  %v1801_v24 = vld [vmem:[#allocation4 + $0x38] sm:$0xf0] }
 0x3e4   : > { %v1804_v25 = vor.u32 %v1941_v22, %v1801_v24 }
 0x3e6   : > { %1304 = vmatpush.bf16.msrb.mxu1 %v1804_v25 }
 0x457   : > { %v875_v30 = vpop.f32.mrf.mxu3 }
 0x458   : > { %v878_v31 = vpack.c.bf16 %v875_v30, %v875_v30  ;;  %v1796_v30 = vor.u32 %v1939_v27, %v1793_v29 }
 0x45a   : > { %1739 = vmatmul.msk.bf16.vlgmr.msra.gmra.mxu3 %vm738_vm0, %v878_v31  ;;  %1305 = vmatpush.bf16.msrb.mxu1 %v1796_v30  ;;  %v1783_v31 = vld [vmem:[#allocation4 + $0x10] sm:$0xf] }
 0x45b   : > { %1287 = vmatpush.bf16.msra.mxu3 %v1832_v52 }
 0x45f   : > { %1288 = vmatpush.bf16.msra.mxu3 %v1824_v4  ;;  %v1955_v4 = vld [vmem:[#allocation6 + $0x20] sm:$0xff] }
 0x463   : > { %1289 = vmatpush.bf16.msra.mxu3 %v1816_v10  ;;  %v1952_v10 = vld [vmem:[#allocation6 + $0x8] sm:$0xff] }
 0x466   : > { %v1104_v33 = vpop.f32.mrf.mxu2 }
 0x467   : > { %v1107_v34 = vpack.c.bf16 %v1104_v33, %v1104_v33  ;;  %1290 = vmatpush.bf16.msra.mxu3 %v1808_v16  ;;  %v1937_v33 = vld [vmem:[#allocation4 + $0x14] sm:$0xf] }
 0x469   : > { %1772 = vmatmul.msk.bf16.vlgmr.msra.gmra.mxu0 %vm738_vm0, %v1107_v34  ;;  %v1784_v34 = vor.u32 %v1938_v32, %v1783_v31 }
 0x46a   : > { %1760 = vmatmul.msk.bf16.vlgmr.msrb.gmra.mxu3 %vm738_vm0, %v1006_v35  ;;  %v1785_v35 = vld [vmem:[#allocation4 + $0x18] sm:$0xf0] }
 0x46b   : > { %1291 = vmatpush.bf16.msra.mxu3 %v1800_v23 }
 0x46f   : > { %1292 = vmatpush.bf16.msra.mxu3 %v1792_v28 }
 0x473   : > { %1293 = vmatpush.bf16.msra.mxu3 %v1784_v34 }
 0x4dd   : > { %v907_v36 = vpop.f32.mrf.mxu3 }
 0x4de   : > { %v936_v39 = vadd.f32 %v2481_v0, %v907_v36  ;;  %v1788_v36 = vor.u32 %v1937_v33, %v1785_v35 }
 0x4e0   : > { %1306 = vmatpush.bf16.msrb.mxu1 %v1788_v36 }
 0x4e5   : > { %v909_v37 = vpop.f32.mrf.mxu3 }
 0x4e6   : > { %v1136_v38 = vpop.f32.mrf.mxu0  ;;  %v1775_v37 = vld [vmem:[#allocation4] sm:$0xf] }
 0x4ed   : > { %v1035_v40 = vpop.f32.mrf.mxu3 }
 0x4ee   : > { %v1039_v41 = vadd.f32 %v1035_v40, %v936_v39  ;;  %v1138_v42 = vpop.f32.mrf.mxu0  ;;  %v1935_v39 = vld [vmem:[#allocation4 + $0x4] sm:$0xf] }
 0x4f0   : > { %v1140_v44 = vadd.f32 %v1136_v38, %v1039_v41  ;;  %v1936_v38 = vld [vmem:[#allocation4 + $0x4] sm:$0xf0]  ;;  %v1777_v41 = vld [vmem:[#allocation4 + $0x8] sm:$0xf0] }
 0x4f1   : > { %v1776_v40 = vor.u32 %v1936_v38, %v1775_v37  ;;  %v1780_v42 = vor.u32 %v1935_v39, %v1777_v41 }
 0x4f2   : > { %v1145_v45 = vadd.f32 %v2015_v43, %v1140_v44  ;;  %v1966_v43 = vld [vmem:[#allocation6 + $0x78] sm:$0xff] }
 0x4f3   : > { %1294 = vmatpush.bf16.msra.mxu3 %v1776_v40  ;;  %1307 = vmatpush.bf16.msrb.mxu1 %v1780_v42 }
 0x4f4   : > { %v1146_v46 = vadd.f32 %v1145_v45, %v2425_v62  ;;  %1478 = vmatpush.bf16.msrb.mxu0 %v1966_v43  ;;  %v2018_v43 = vld [vmem:[%s2553_s11] ss:$0 sm:$0xff] }
 0x4f5   : > { %v1037_v47 = vpop.f32.mrf.mxu3 }
 0x4f6   : > { %1149 = vadd.xlane.f32.xlu2 %v1146_v46 }
 0x569   : > { %v1150_v62 = vpop.xlane.xlu2 %1149 }
 0x56a   : > { %v1158_v61 = vmul.f32 %v2500_v60, %v1150_v62  ;;  %v1965_v62 = vld [vmem:[#allocation6 + $0x70] sm:$0xff] }
 0x56b   : > { %1479 = vmatpush.bf16.msrb.mxu0 %v1965_v62 }
 0x56c   : > { %v2503_v63 = vsub.f32 %v1146_v46, %v1158_v61  ;;  %v1958_v61 = vld [vmem:[#allocation6 + $0x38] sm:$0xff] }
 0x56d   : > { %1465 = vmatpush.bf16.msrb.mxu2 %v1958_v61 }
 0x56e   : > { %v1160_v0 = vmul.f32 %v2503_v63, %v2503_v63 }
 0x570   : > { %1161 = vadd.xlane.f32.xlu0 %v1160_v0  ;;  %v1964_v0 = vld [vmem:[#allocation6 + $0x68] sm:$0xff] }
 0x571   : > { %1480 = vmatpush.bf16.msrb.mxu0 %v1964_v0  ;;  %1466 = vmatpush.bf16.msrb.mxu2 %v1957_v1  ;;  %v2019_v0 = vld [vmem:[%s2554_s12] ss:$0 sm:$0xff] }
 0x575   : > { %1467 = vmatpush.bf16.msrb.mxu2 %v1956_v2 }
 0x579   : > { %1468 = vmatpush.bf16.msrb.mxu2 %v1955_v4 }
 0x57d   : > { %1469 = vmatpush.bf16.msrb.mxu2 %v1954_v6 }
 0x581   : > { %1470 = vmatpush.bf16.msrb.mxu2 %v1953_v8 }
 0x585   : > { %1471 = vmatpush.bf16.msrb.mxu2 %v1952_v10 }
 0x589   : > { %1472 = vmatpush.bf16.msrb.mxu2 %v1951_v12 }
 0x5e3   : > { %v1162_v44 = vpop.xlane.xlu0 %1161 }
 0x5e4   : > { %v1163_v45 = vmul.f32 %v1162_v44, %v2500_v60 }
 0x5e6   : > { %v1164_v46 = vadd.f32 1e-05, %v1163_v45 }
 0x5e8   : > { %2039 = vrsqrt.f32 %v1164_v46  ;;  %vm1171_vm4 = vweird.f32 %v1164_v46 }
 0x5ee   : > { %v2040_v47 = vpop.eup %2039 }
 0x5ef   : > { %v1166_v48 = vmul.f32 %v2040_v47, %v1164_v46  ;;  %vm1172_vm3 = vweird.f32 %v2040_v47 }
 0x5f0   : > { %vm1173_vm5 = vmor %vm1171_vm4, %vm1172_vm3 }
 0x5f1   : > { %v1167_v49 = vmul.f32 %v2040_v47, %v1166_v48 }
 0x5f3   : > { %v1168_v50 = vmul.f32 0.5, %v1167_v49 }
 0x5f5   : > { %v1169_v51 = vsub.f32 1.5, %v1168_v50 }
 0x5f7   : > { %v1170_v52 = vmul.f32 %v2040_v47, %v1169_v51 }
 0x5f9   : > { %v1174_v54 = vsel %vm1173_vm5, %v2040_v47, %v1170_v52 }
 0x5fa   : > { %v1175_v55 = vmul.f32 %v1174_v54, %v2503_v63  ;;  %v1963_v63 = vld [vmem:[#allocation6 + $0x60] sm:$0xff] }
 0x5fb   : > { %1481 = vmatpush.bf16.msrb.mxu0 %v1963_v63 }
 0x5fc   : > { %v1179_v57 = vmul.f32 %v2016_v53, %v1175_v55 }
 0x5fe   : > { %v2515_v58 = vadd.f32 %v2017_v56, %v1179_v57 }
 0x5ff   : > { %1482 = vmatpush.bf16.msrb.mxu0 %v1962_v3 }
 0x600   : > { %v1184_v59 = vpack.c.bf16 %v2515_v58, %v2515_v58 }
 0x602   : > { %1295 = vmatmul.bf16.vlgmr.msra.gmra.mxu3 %v1184_v59  ;;  %1308 = vmatmul.bf16.vlgmr.msrb.gmra.mxu1 %v1184_v59 }
 0x603   : > { %1483 = vmatpush.bf16.msrb.mxu0 %v1961_v5 }
 0x607   : > { %1484 = vmatpush.bf16.msrb.mxu0 %v1960_v7 }
 0x60b   : > { %1485 = vmatpush.bf16.msrb.mxu0 %v1959_v9 }
 0x67f   : > { %v1309_v14 = vpop.f32.mrf.mxu1 }
 0x680   : > { %v1310_v15 = vadd.f32 %v1309_v14, %v1204_v13 }
 0x682   : > { %v1314_v16 = vmul.f32 %v1310_v15, %v1310_v15 }
 0x684   : > { %v1316_v18 = vmul.f32 %v1314_v16, %v1310_v15 }
 0x685   : > { %v1296_v19 = vpop.f32.mrf.mxu3 }
 0x686   : > { %v1318_v20 = vmul.f32 0.044715, %v1316_v18  ;;  %v1297_v22 = vadd.f32 %v1296_v19, %v1203_v17 }
 0x687   : > { %v1311_v23 = vpop.f32.mrf.mxu1 }
 0x688   : > { %v1320_v24 = vadd.f32 %v1318_v20, %v1310_v15  ;;  %v1313_v25 = vmul.f32 %v1297_v22, %v1297_v22 }
 0x68a   : > { %v1322_v26 = vmul.f32 0.7978846, %v1320_v24  ;;  %v1315_v21 = vmul.f32 %v1313_v25, %v1297_v22 }
 0x68c   : > { %2041 = vtanh.f32 %v1322_v26  ;;  %v1317_v27 = vmul.f32 0.044715, %v1315_v21 }
 0x68d   : > { %v1298_v28 = vpop.f32.mrf.mxu3 }
 0x68e   : > { %v1319_v29 = vadd.f32 %v1317_v27, %v1297_v22 }
 0x690   : > { %v1321_v30 = vmul.f32 0.7978846, %v1319_v29 }
 0x692   : > { %v2042_v31 = vpop.eup %2041  ;;  %2043 = vtanh.f32 %v1321_v30 }
 0x693   : > { %v1326_v32 = vadd.f32 1.0, %v2042_v31 }
 0x695   : > { %v1328_v33 = vmul.f32 0.5, %v1326_v32 }
 0x697   : > { %v1330_v34 = vmul.f32 %v1328_v33, %v1310_v15 }
 0x698   : > { %v2044_v35 = vpop.eup %2043 }
 0x699   : > { %v1332_v36 = vpack.c.bf16 %v1330_v34, %v1330_v34  ;;  %v1325_v37 = vadd.f32 1.0, %v2044_v35 }
 0x69b   : > { %1486 = vmatmul.bf16.vlgmr.msrb.gmra.mxu0 %v1332_v36  ;;  %v1327_v38 = vmul.f32 0.5, %v1325_v37 }
 0x69d   : > { %v1329_v39 = vmul.f32 %v1327_v38, %v1297_v22 }
 0x69f   : > { %v1331_v40 = vpack.c.bf16 %v1329_v39, %v1329_v39 }
 0x6a1   : > { %1473 = vmatmul.bf16.vlgmr.msrb.gmra.mxu2 %v1331_v40 }
 0x718   : > { %v1487_v41 = vpop.f32.mrf.mxu0 }
 0x720   : > { %v1489_v42 = vpop.f32.mrf.mxu0 }
 0x724   : > { %v1474_v44 = vpop.f32.mrf.mxu2 }
 0x725   : > { %v1475_v45 = vadd.f32 %v2018_v43, %v1474_v44 }
 0x727   : > { %v1488_v46 = vadd.f32 %v1487_v41, %v1475_v45 }
 0x729   : > { %v1491_v47 = vadd.f32 %v1488_v46, %v2515_v58 }
 0x72b   : > { %1494 = vadd.xlane.f32.xlu1 %v1491_v47 }
 0x72c   : > { %v1476_v48 = vpop.f32.mrf.mxu2 }
 0x79e   : > { %v1495_v49 = vpop.xlane.xlu1 %1494 }
 0x79f   : > { %v1496_v50 = vmul.f32 %v1495_v49, %v2500_v60 }
 0x7a1   : > { %v1497_v51 = vsub.f32 %v1491_v47, %v1496_v50 }
 0x7a3   : > { %v1498_v52 = vmul.f32 %v1497_v51, %v1497_v51 }
 0x7a5   : > { %1499 = vadd.xlane.f32.xlu2 %v1498_v52 }
 0x818   : > { %v1500_v53 = vpop.xlane.xlu2 %1499 }
 0x819   : > { %v1501_v54 = vmul.f32 %v1500_v53, %v2500_v60  ;;  %v2020_v60 = vld [vmem:[%s2555_s13] ss:$0 sm:$0xff] }
 0x81b   : > { %v1502_v55 = vadd.f32 1e-05, %v1501_v54 }
 0x81d   : > { %2045 = vrsqrt.f32 %v1502_v55  ;;  %vm1509_vm7 = vweird.f32 %v1502_v55 }
 0x823   : > { %v2046_v56 = vpop.eup %2045 }
 0x824   : > { %v1504_v57 = vmul.f32 %v2046_v56, %v1502_v55  ;;  %vm1510_vm6 = vweird.f32 %v2046_v56 }
 0x825   : > { %vm1511_vm8 = vmor %vm1509_vm7, %vm1510_vm6 }
 0x826   : > { %v1505_v59 = vmul.f32 %v2046_v56, %v1504_v57 }
 0x828   : > { %v1506_v62 = vmul.f32 0.5, %v1505_v59 }
 0x82a   : > { %v1507_v61 = vsub.f32 1.5, %v1506_v62 }
 0x82c   : > { %v1508_v58 = vmul.f32 %v2046_v56, %v1507_v61 }
 0x82e   : > { %v1512_v1 = vsel %vm1511_vm8, %v2046_v56, %v1508_v58 }
 0x82f   : > { %v1513_v63 = vmul.f32 %v1512_v1, %v1497_v51 }
 0x831   : > { %v1517_v2 = vmul.f32 %v2019_v0, %v1513_v63 }
 0x833   : > { %v1521_v3 = vadd.f32 %v2020_v60, %v1517_v2 }
 0x835   : > { %1522 = vst [vmem:[%s526_s22] sm:$0xff] %v1521_v3 }
 0x836 PF: > { %s26_s29 = sadd.s32 1, %s2151_s29  }
 0x837   : > { %p23_p7 = scmp.ge.s32.totalorder %s26_s29, 4  }
 0x839   :  { %25 = sbr.rel (!%p23_p7) target bundleno = 5 (0x5), region = 122 }
 0x83e   :  { %1542 = vsyncpa [#allocation3], 1 }
 0x83f   :  { %1544 = vsyncpa [#allocation3 + $0x1], 1 }
 0x840   :  { %1545 = vsyncpa [#allocation5], 1 }

// kernel: roberta_classifier_forward.5
= control target key start
LH: loop header
LB: loop body
LE: loop exit
PB: predicated region body
PF: predicated region fallthrough
CT: control target
= control target key end

     0   :  { %19 = vsyncpa [#allocation3], 0  ;;  %s2485_s0 = inlined_call_operand.vmem [shape: f32[2,8,128], index: 0, kind: input, shape index: {}]   ;;  %s2486_s1 = inlined_call_operand.vmem [shape: f32[2,1,8], index: 1, kind: input, shape index: {}]   ;;  %s2487_s2 = inlined_call_operand.vmem [shape: bf16[128,384], index: 2, kind: input, shape index: {}]   ;;  %s2488_s3 = inlined_call_operand.vmem [shape: f32[1,384], index: 3, kind: input, shape index: {}]   ;;  %s2489_s4 = inlined_call_operand.vmem [shape: bf16[128,128], index: 4, kind: input, shape index: {}]   ;;  %s2490_s5 = inlined_call_operand.vmem [shape: f32[1,128], index: 5, kind: input, shape index: {}]   ;;  %s2491_s6 = inlined_call_operand.vmem [shape: f32[1,128], index: 6, kind: input, shape index: {}]   ;;  %s2492_s7 = inlined_call_operand.vmem [shape: f32[1,128], index: 7, kind: input, shape index: {}]   ;;  %s2493_s8 = inlined_call_operand.hbm [shape: bf16[128,256], index: 8, kind: input, shape index: {}]   ;;  %s2494_s9 = inlined_call_operand.vmem [shape: f32[1,256], index: 9, kind: input, shape index: {}]   ;;  %s2495_s10 = inlined_call_operand.hbm [shape: bf16[256,128], index: 10, kind: input, shape index: {}]   ;;  %s2496_s11 = inlined_call_operand.vmem [shape: f32[1,128], index: 11, kind: input, shape index: {}]   ;;  %s2497_s12 = inlined_call_operand.vmem [shape: f32[1,128], index: 12, kind: input, shape index: {}]   ;;  %s2498_s13 = inlined_call_operand.vmem [shape: f32[1,128], index: 13, kind: input, shape index: {}]   ;;  %s2499_s14 = inlined_call_operand.vmem [shape: f32[2,8,128], index: 14, kind: output, shape index: {}]  }
   0x1   :  { %20 = vsyncpa [#allocation5], 0  ;;  %s2171_s29 = smov 0  }
   0x2 LB: > { %s390_s16 = sshll.u32 %s2493_s8, 4  ;;  %s2180_s17 = sadd.s32 4294967295, %s2084_s29   ;;  %s2084_s29 = sphi %s2171_s29, %s26_s29   ;;  %s391_s16 = int_to_ptr.hbm [resolvable:$true] %s390_s16 }
   0x3   : > { %p1593_p0 = scmp.ge.s32.totalorder %s2084_s29, 1  ;;  %p361_p1 = scmp.lt.s32.totalorder %s2084_s29, 3 }
   0x4   : > { %p1955_p2 = scmp.eq.s32.totalorder %s2180_s17, 0  ;;  %s2086_s19 = smov [#allocation2]  }
   0x5   : > { %p2185_p3 = pnand %p1593_p0, %p361_p1  ;;  %s392_s20 = sshll.u32 %s2086_s19, 4  ;;  %s393_s20 = int_to_ptr.vmem [resolvable:$true] %s392_s20 }
   0x6   : > { %s407_s23 = sshll.u32 %s2495_s10, 4  ;;  %s2087_s24 = smov [#allocation4]   ;;  %s408_s23 = int_to_ptr.hbm [resolvable:$true] %s407_s23 }
   0x7   : > { %p1948_p4 = pneg %p2185_p3  ;;  %s409_s25 = sshll.u32 %s2087_s24, 4  ;;  %s410_s25 = int_to_ptr.vmem [resolvable:$true] %s409_s25 }
   0x8   : > { %s2088_s26 = smov 128   ;;  %s2089_s27 = smov 8  }
   0x9   : > { %p1949_p5 = pnand %p1955_p2, %p1948_p4  ;;  %s2090_s28 = smov 64  }
   0xa   : > { %s2091_s30 = smov 4   ;;  %447 = sbr.rel (%p2185_p3) target bundleno = 2095 (0x82f), region = 76 }
   0xb   : > { %1951 = dma.hbm_to_vmem [thread:$0]  (!%p1949_p5), %s391_s16, 2048, %s393_s20, [#allocation3], %s2088_s26, %s2088_s26, %s2089_s27  }
   0xc   : > { %1954 = dma.hbm_to_vmem [thread:$0]  (!%p1949_p5), %s408_s23, 2048, %s410_s25, [#allocation5], %s2090_s28, %s2090_s28, %s2091_s30  }
   0xf   : > { %2075 = dma.done.wait (%p1955_p2), [#allocation3], 2048  }
  0x10   : > { %2077 = vsyncadd (%p1955_p2), [#allocation3], 4294965248 }
  0x11   : > { %2079 = dma.done.wait (%p1955_p2), [#allocation5], 2048  }
  0x12   : > { %2081 = vsyncadd (%p1955_p2), [#allocation5], 4294965248  ;;  %v1688_v0 = vld [vmem:[%s2487_s2 + $0xa8] sm:$0xf]  ;;  %v1898_v1 = vld [vmem:[%s2487_s2 + $0xb0] sm:$0xf0] }
  0x13   : > { %v1897_v2 = vld [vmem:[%s2487_s2 + $0xac] sm:$0xf]  ;;  %v1689_v3 = vor.u32 %v1898_v1, %v1688_v0  ;;  %v1690_v4 = vld [vmem:[%s2487_s2 + $0xb4] sm:$0xf0]  ;;  %v1676_v5 = vld [vmem:[%s2487_s2 + $0x90] sm:$0xf] }
  0x14   : > { %v1895_v6 = vld [vmem:[%s2487_s2 + $0x98] sm:$0xf0]  ;;  %v1693_v7 = vor.u32 %v1897_v2, %v1690_v4  ;;  %v1894_v8 = vld [vmem:[%s2487_s2 + $0x94] sm:$0xf]  ;;  %v1678_v9 = vld [vmem:[%s2487_s2 + $0x9c] sm:$0xf0] }
  0x15   : > { %683 = vmatpush.bf16.msra.mxu0 %v1689_v3  ;;  %v1677_v10 = vor.u32 %v1895_v6, %v1676_v5  ;;  %v1681_v11 = vor.u32 %v1894_v8, %v1678_v9  ;;  %v1664_v12 = vld [vmem:[%s2487_s2 + $0x78] sm:$0xf]  ;;  %v1892_v13 = vld [vmem:[%s2487_s2 + $0x80] sm:$0xf0]  ;;  %v1891_v14 = vld [vmem:[%s2487_s2 + $0x7c] sm:$0xf] }
  0x16   : > { %696 = vmatpush.bf16.msra.mxu1 %v1693_v7  ;;  %v1666_v15 = vld [vmem:[%s2487_s2 + $0x84] sm:$0xf0]  ;;  %v1665_v16 = vor.u32 %v1892_v13, %v1664_v12  ;;  %v1652_v18 = vld [vmem:[%s2487_s2 + $0x60] sm:$0xf]  ;;  %v1889_v19 = vld [vmem:[%s2487_s2 + $0x68] sm:$0xf0] }
  0x17   : > { %v1669_v17 = vor.u32 %v1891_v14, %v1666_v15  ;;  %v1888_v20 = vld [vmem:[%s2487_s2 + $0x64] sm:$0xf]  ;;  %v1654_v21 = vld [vmem:[%s2487_s2 + $0x6c] sm:$0xf0]  ;;  %p500_p6 = scmp.lt.s32.totalorder %s2180_s17, 1  ;;  %v1653_v22 = vor.u32 %v1889_v19, %v1652_v18  ;;  %vm722_vm0 = vcmask 261120  }
  0x18   : > { %v1696_v23 = vld [vmem:[%s2487_s2 + $0xb0] sm:$0xf]  ;;  %v1899_v24 = vld [vmem:[%s2487_s2 + $0xb8] sm:$0xf0]  ;;  %v1684_v25 = vld [vmem:[%s2487_s2 + $0x98] sm:$0xf]  ;;  %v1657_v26 = vor.u32 %v1888_v20, %v1654_v21 }
  0x19   : > { %684 = vmatpush.bf16.msra.mxu0 %v1677_v10  ;;  %v1640_v27 = vld [vmem:[%s2487_s2 + $0x48] sm:$0xf]  ;;  %v1886_v28 = vld [vmem:[%s2487_s2 + $0x50] sm:$0xf0]  ;;  %v1697_v29 = vor.u32 %v1899_v24, %v1696_v23  ;;  %v1896_v30 = vld [vmem:[%s2487_s2 + $0xa0] sm:$0xf0] }
  0x1a   : > { %697 = vmatpush.bf16.msra.mxu1 %v1681_v11  ;;  %v1885_v31 = vld [vmem:[%s2487_s2 + $0x4c] sm:$0xf]  ;;  %v1642_v32 = vld [vmem:[%s2487_s2 + $0x54] sm:$0xf0]  ;;  %s2502_s17 = smov (!%p500_p6, %s2180_s17), 1  ;;  %v1685_v33 = vor.u32 %v1896_v30, %v1684_v25  ;;  %v1641_v34 = vor.u32 %v1886_v28, %v1640_v27  ;;  %s2092_s22 = smov 64  }
  0x1b   : > { %709 = vmatpush.bf16.msra.mxu2 %v1697_v29  ;;  %v1628_v35 = vld [vmem:[%s2487_s2 + $0x30] sm:$0xf]  ;;  %v1672_v36 = vld [vmem:[%s2487_s2 + $0x80] sm:$0xf]  ;;  %v1893_v37 = vld [vmem:[%s2487_s2 + $0x88] sm:$0xf0]  ;;  %v1645_v38 = vor.u32 %v1885_v31, %v1642_v32  ;;  %s506_s26 = scalar_lea.vmem %s2486_s1, %s2502_s17 }
  0x1c   : > { %v1883_v39 = vld [vmem:[%s2487_s2 + $0x38] sm:$0xf0]  ;;  %v1882_v40 = vld [vmem:[%s2487_s2 + $0x34] sm:$0xf]  ;;  %v1630_v41 = vld [vmem:[%s2487_s2 + $0x3c] sm:$0xf0]  ;;  %v1673_v42 = vor.u32 %v1893_v37, %v1672_v36 }
  0x1d   : > { %685 = vmatpush.bf16.msra.mxu0 %v1665_v16  ;;  %v1629_v43 = vor.u32 %v1883_v39, %v1628_v35  ;;  %v1660_v44 = vld [vmem:[%s2487_s2 + $0x68] sm:$0xf]  ;;  %v1890_v45 = vld [vmem:[%s2487_s2 + $0x70] sm:$0xf0]  ;;  %v1633_v46 = vor.u32 %v1882_v40, %v1630_v41  ;;  %v1616_v47 = vld [vmem:[%s2487_s2 + $0x18] sm:$0xf] }
  0x1e   : > { %698 = vmatpush.bf16.msra.mxu1 %v1669_v17  ;;  %v1880_v48 = vld [vmem:[%s2487_s2 + $0x20] sm:$0xf0]  ;;  %v1879_v49 = vld [vmem:[%s2487_s2 + $0x1c] sm:$0xf]  ;;  %v1618_v50 = vld [vmem:[%s2487_s2 + $0x24] sm:$0xf0]  ;;  %v1661_v51 = vor.u32 %v1890_v45, %v1660_v44 }
  0x1f   : > { %710 = vmatpush.bf16.msra.mxu2 %v1685_v33  ;;  %s1600_s19 = sshll.u32 %s2502_s17, 3  ;;  %v1617_v52 = vor.u32 %v1880_v48, %v1616_v47  ;;  %v1648_v53 = vld [vmem:[%s2487_s2 + $0x50] sm:$0xf]  ;;  %v1887_v54 = vld [vmem:[%s2487_s2 + $0x58] sm:$0xf0]  ;;  %v1621_v55 = vor.u32 %v1879_v49, %v1618_v50  ;;  %s2093_s23 = smov 96  }
  0x20   : > { %v1604_v56 = vld [vmem:[%s2487_s2] sm:$0xf]  ;;  %v1877_v57 = vld [vmem:[%s2487_s2 + $0x8] sm:$0xf0]  ;;  %s503_s30 = scalar_lea.vmem %s2485_s0, %s1600_s19  ;;  %v1876_v58 = vld [vmem:[%s2487_s2 + $0x4] sm:$0xf]  ;;  %v1649_v60 = vor.u32 %v1887_v54, %v1648_v53  ;;  %s510_s21 = scalar_lea.vmem %s2499_s14, %s1600_s19 }
  0x21   : > { %686 = vmatpush.bf16.msra.mxu0 %v1653_v22  ;;  %v1606_v59 = vld [vmem:[%s2487_s2 + $0xc] sm:$0xf0]  ;;  %v1605_v61 = vor.u32 %v1877_v57, %v1604_v56  ;;  %v2344_v62 = vld [vmem:[%s503_s30] sm:$0xff]  ;;  %v1636_v63 = vld [vmem:[%s2487_s2 + $0x38] sm:$0xf]  ;;  %s2094_s27 = smov 32  }
  0x22   : > { %699 = vmatpush.bf16.msra.mxu1 %v1657_v26  ;;  %v1884_v0 = vld [vmem:[%s2487_s2 + $0x40] sm:$0xf0]  ;;  %v1609_v1 = vor.u32 %v1876_v58, %v1606_v59  ;;  %v514_v2 = vpack.c.bf16 %v2344_v62, %v2344_v62  ;;  %v1624_v4 = vld [vmem:[%s2487_s2 + $0x20] sm:$0xf]  ;;  %v1881_v5 = vld [vmem:[%s2487_s2 + $0x28] sm:$0xf0] }
  0x23   : > { %711 = vmatpush.bf16.msra.mxu2 %v1673_v42  ;;  %v1637_v3 = vor.u32 %v1884_v0, %v1636_v63  ;;  %v1625_v6 = vor.u32 %v1881_v5, %v1624_v4  ;;  %v1612_v7 = vld [vmem:[%s2487_s2 + $0x8] sm:$0xf]  ;;  %v1878_v8 = vld [vmem:[%s2487_s2 + $0x10] sm:$0xf0]  ;;  %v547_v10 = vld [vmem:[%s2488_s3] sm:$0x7] }
  0x24   : > { %v1613_v9 = vor.u32 %v1878_v8, %v1612_v7  ;;  %v550_v11 = vperm.slane %v547_v10, 1  ;;  %v549_v12 = vperm.slane %v547_v10, 0  ;;  %v551_v19 = vperm.slane %v547_v10, 2  ;;  %v1977_v26 = vld [vmem:[%s506_s26] ss:$0 sm:$0xff] }
  0x25   : > { %687 = vmatpush.bf16.msra.mxu0 %v1641_v34  ;;  %vm754_vm1 = vcmask 64512  }
  0x26   : > { %700 = vmatpush.bf16.msra.mxu1 %v1645_v38 }
  0x27   : > { %712 = vmatpush.bf16.msra.mxu2 %v1661_v51  ;;  %v1901_v51 = vld [vmem:[%s2489_s4 + $0x8] sm:$0xff] }
  0x29   : > { %688 = vmatpush.bf16.msra.mxu0 %v1629_v43 }
  0x2a   : > { %701 = vmatpush.bf16.msra.mxu1 %v1633_v46 }
  0x2b   : > { %713 = vmatpush.bf16.msra.mxu2 %v1649_v60 }
  0x2d   : > { %689 = vmatpush.bf16.msra.mxu0 %v1617_v52  ;;  %v1900_v52 = vld [vmem:[%s2489_s4] sm:$0xff] }
  0x2e   : > { %702 = vmatpush.bf16.msra.mxu1 %v1621_v55 }
  0x2f   : > { %714 = vmatpush.bf16.msra.mxu2 %v1637_v3 }
  0x31   : > { %690 = vmatpush.bf16.msra.mxu0 %v1605_v61 }
  0x32   : > { %703 = vmatpush.bf16.msra.mxu1 %v1609_v1 }
  0x33   : > { %715 = vmatpush.bf16.msra.mxu2 %v1625_v6 }
  0x34   : > { %691 = vmatmul.bf16.vlgmr.msra.gmra.mxu0 %v514_v2 }
  0x35   : > { %704 = vmatmul.bf16.vlgmr.msra.gmra.mxu1 %v514_v2  ;;  %916 = vmatpush.bf16.msrb.mxu0 %v1901_v51  ;;  %v1922_v51 = vld [vmem:[#allocation2 + $0x74] sm:$0xf] }
  0x37   : > { %716 = vmatpush.bf16.msra.mxu2 %v1613_v9 }
  0x39   : > { %917 = vmatpush.bf16.msrb.mxu0 %v1900_v52 }
  0x3a   : > { %717 = vmatmul.bf16.vlgmr.msra.gmra.mxu2 %v514_v2 }
  0xb1   : > { %v692_v13 = vpop.f32.mrf.mxu0 }
  0xb2   : > { %v705_v14 = vpop.f32.mrf.mxu1  ;;  %v693_v16 = vadd.f32 %v692_v13, %v549_v12 }
  0xb3   : > { %v706_v15 = vadd.f32 %v705_v14, %v550_v11 }
  0xb5   : > { %925 = vrot.lane.b32.xlu2 %v706_v15, %s2092_s22  ;;  %796 = vrot.lane.b32.xlu1 %v706_v15, %s2093_s23 }
  0xb6   : > { %1698 = vmatpush.xpose.msk.msra.mxu3 %vm722_vm0, %v706_v15 }
  0xb9   : > { %1699 = vmatmul.msk.f32.vlgmr.msra.gmra.mxu3 %vm722_vm0, %v693_v16  ;;  %v694_v17 = vpop.f32.mrf.mxu0 }
  0xba   : > { %v707_v18 = vpop.f32.mrf.mxu1 }
  0xbb   : > { %v1903_v18 = vld [vmem:[%s2489_s4 + $0x18] sm:$0xff] }
  0xbd   : > { %923 = vrot.lane.b32.xlu2 %v693_v16, %s2092_s22  ;;  %794 = vrot.lane.b32.xlu1 %v693_v16, %s2093_s23  ;;  %v718_v20 = vpop.f32.mrf.mxu2 }
  0xbe   : > { %v2380_v21 = vadd.f32 %v718_v20, %v551_v19 }
  0xc0   : > { %784 = vmatpush.msrb.mxu3 %v2380_v21 }
  0xc5   : > { %1024 = vrot.lane.b32.xlu1 %v693_v16, %s2094_s27  ;;  %v720_v22 = vpop.f32.mrf.mxu2 }
 0x10f   : > { %v926_v23 = vpop.permute.xlu2 %925 }
 0x110   : > { %1722 = vmatpush.xpose.msk.msrb.mxu1 %vm722_vm0, %v926_v23 }
 0x117   : > { %v924_v24 = vpop.permute.xlu2 %923 }
 0x118   : > { %1723 = vmatmul.msk.f32.vlgmr.msrb.gmra.mxu1 %vm722_vm0, %v924_v24 }
 0x127   : > { %v797_v25 = vpop.permute.xlu1 %796 }
 0x128   : > { %1701 = vmatpush.xpose.msk.msra.mxu3 %vm722_vm0, %v797_v25 }
 0x12f   : > { %v795_v40 = vpop.permute.xlu1 %794 }
 0x137   : > { %v1025_v41 = vpop.permute.xlu1 %1024 }
 0x13c   : > { %v746_v27 = vpop.f32.mrf.mxu3 }
 0x13d   : > { %v749_v28 = vmul.f32 0.17677669, %v746_v27  ;;  %v1907_v27 = vld [vmem:[%s2489_s4 + $0x38] sm:$0xff] }
 0x13e   : > { %1117 = vmatpush.bf16.msra.mxu0 %v1907_v27  ;;  %v1912_v27 = vld [vmem:[#allocation2 + $0x24] sm:$0xf] }
 0x13f   : > { %v753_v29 = vadd.f32 %v1977_v26, %v749_v28  ;;  %v1906_v28 = vld [vmem:[%s2489_s4 + $0x30] sm:$0xff] }
 0x141   : > { %v755_v30 = vsel %vm754_vm1, %v753_v29, -inf }
 0x142   : > { %756 = vmax.xlane.f32.xlu0 %v755_v30  ;;  %1118 = vmatpush.bf16.msra.mxu0 %v1906_v28 }
 0x195   : > { %v948_v31 = vpop.f32.mrf.mxu1 }
 0x196   : > { %v951_v32 = vmul.f32 0.17677669, %v948_v31 }
 0x198   : > { %v952_v33 = vadd.f32 %v1977_v26, %v951_v32 }
 0x19a   : > { %v953_v34 = vsel %vm754_vm1, %v952_v33, -inf }
 0x19b   : > { %954 = vmax.xlane.f32.xlu1 %v953_v34 }
 0x1b5   : > { %v757_v35 = vpop.xlane.xlu0 %756 }
 0x1b6   : > { %v758_v36 = vsub.f32 %v753_v29, %v757_v35  ;;  %v1904_v29 = vld [vmem:[%s2489_s4 + $0x20] sm:$0xff] }
 0x1b8   : > { %v759_v37 = vmul.f32 1.442695, %v758_v36 }
 0x1ba   : > { %1984 = vpow2.f32 %v759_v37 }
 0x1c0   : > { %v1985_v38 = vpop.eup %1984 }
 0x1c1   : > { %v761_v39 = vsel %vm754_vm1, %v1985_v38, 0.0 }
 0x1c2   : > { %762 = vadd.xlane.f32.xlu0 %v761_v39 }
 0x1d6   : > { %1026 = vrot.lane.b32.xlu0 %v706_v15, %s2094_s27 }
 0x20e   : > { %v955_v42 = vpop.xlane.xlu1 %954 }
 0x20f   : > { %v956_v43 = vsub.f32 %v952_v33, %v955_v42 }
 0x211   : > { %v957_v44 = vmul.f32 1.442695, %v956_v43  ;;  %v1978_v43 = vld [vmem:[%s2490_s5] ss:$0 sm:$0xff] }
 0x213   : > { %1986 = vpow2.f32 %v957_v44 }
 0x219   : > { %v1987_v45 = vpop.eup %1986 }
 0x21a   : > { %v959_v46 = vsel %vm754_vm1, %v1987_v45, 0.0 }
 0x21b   : > { %960 = vadd.xlane.f32.xlu1 %v959_v46 }
 0x235   : > { %v763_v47 = vpop.xlane.xlu0 %762 }
 0x236   : > { %1988 = vrcp.f32 %v763_v47 }
 0x23c   : > { %v1989_v48 = vpop.eup %1988 }
 0x23d   : > { %v765_v49 = vmul.f32 %v1989_v48, %v1985_v38  ;;  %v2095_v48 = vmov 128.0  }
 0x23f   : > { %1700 = vmatmul.msk.f32.vlgmr.msrb.gmra.mxu3 %vm754_vm1, %v765_v49  ;;  %v1804_v49 = vld [vmem:[#allocation2 + $0x70] sm:$0xf] }
 0x247   : > { %1702 = vmatmul.msk.f32.vlgmr.msra.gmra.mxu3 %vm722_vm0, %v795_v40 }
 0x248   : > { %v1027_v50 = vpop.permute.xlu0 %1026 }
 0x249   : > { %1734 = vmatpush.xpose.msk.msra.mxu1 %vm722_vm0, %v1027_v50  ;;  %v1923_v50 = vld [vmem:[#allocation2 + $0x74] sm:$0xf0] }
 0x24a   : > { %v1805_v52 = vor.u32 %v1923_v50, %v1804_v49 }
 0x24c   : > { %1735 = vmatmul.msk.f32.vlgmr.msra.gmra.mxu1 %vm722_vm0, %v1025_v41 }
 0x28e   : > { %v961_v7 = vpop.xlane.xlu1 %960 }
 0x2c2   : > { %v786_v53 = vpop.f32.mrf.mxu3 }
 0x2c3   : > { %v789_v54 = vpack.c.bf16 %v786_v53, %v786_v53  ;;  %v1806_v53 = vld [vmem:[#allocation2 + $0x78] sm:$0xf0] }
 0x2c5   : > { %1721 = vmatmul.msk.bf16.vlgmr.msrb.gmra.mxu0 %vm722_vm0, %v789_v54  ;;  %v1809_v54 = vor.u32 %v1922_v51, %v1806_v53  ;;  %v1979_v53 = vld [vmem:[%s2491_s6] ss:$0 sm:$0xff] }
 0x2c7   : > { %1284 = vmatpush.bf16.msrb.mxu1 %v1809_v54 }
 0x2c9   : > { %v1049_v55 = vpop.f32.mrf.mxu1 }
 0x2ca   : > { %v1052_v56 = vmul.f32 0.17677669, %v1049_v55  ;;  %v819_v57 = vpop.f32.mrf.mxu3 }
 0x2cb   : > { %v822_v58 = vmul.f32 0.17677669, %v819_v57 }
 0x2cc   : > { %v1053_v59 = vadd.f32 %v1977_v26, %v1052_v56 }
 0x2cd   : > { %v823_v60 = vadd.f32 %v1977_v26, %v822_v58  ;;  %v1905_v26 = vld [vmem:[%s2489_s4 + $0x28] sm:$0xff] }
 0x2ce   : > { %v1054_v61 = vsel %vm754_vm1, %v1053_v59, -inf }
 0x2cf   : > { %1055 = vmax.xlane.f32.xlu0 %v1054_v61  ;;  %v824_v63 = vsel %vm754_vm1, %v823_v60, -inf }
 0x2d0   : > { %825 = vmax.xlane.f32.xlu2 %v824_v63 }
 0x2e3   : > { %964 = vrot.lane.b32.xlu0 %v2380_v21, %s2092_s22 }
 0x342   : > { %v2406_v0 = vpop.f32.mrf.mxu0  ;;  %v1056_v1 = vpop.xlane.xlu0 %1055 }
 0x343   : > { %v1057_v2 = vsub.f32 %v1053_v59, %v1056_v1  ;;  %v826_v3 = vpop.xlane.xlu2 %825  ;;  %v1796_v1 = vld [vmem:[#allocation2 + $0x60] sm:$0xf] }
 0x344   : > { %v827_v4 = vsub.f32 %v823_v60, %v826_v3  ;;  %v1920_v3 = vld [vmem:[#allocation2 + $0x64] sm:$0xf] }
 0x345   : > { %v1058_v5 = vmul.f32 1.442695, %v1057_v2  ;;  %v1921_v2 = vld [vmem:[#allocation2 + $0x64] sm:$0xf0] }
 0x346   : > { %v828_v6 = vmul.f32 1.442695, %v827_v4  ;;  %v1797_v4 = vor.u32 %v1921_v2, %v1796_v1  ;;  %v1930_v1 = vld [vmem:[#allocation4 + $0x30] sm:$0xff]  ;;  %v1929_v2 = vld [vmem:[#allocation4 + $0x28] sm:$0xff] }
 0x347   : > { %1990 = vpow2.f32 %v1058_v5  ;;  %v1798_v5 = vld [vmem:[#allocation2 + $0x68] sm:$0xf0] }
 0x348   : > { %1992 = vpow2.f32 %v828_v6  ;;  %v1801_v6 = vor.u32 %v1920_v3, %v1798_v5  ;;  %v1935_v3 = vld [vmem:[#allocation4 + $0x58] sm:$0xff]  ;;  %v1934_v5 = vld [vmem:[#allocation4 + $0x50] sm:$0xff] }
 0x349   : > { %1994 = vrcp.f32 %v961_v7  ;;  %v1788_v7 = vld [vmem:[#allocation2 + $0x50] sm:$0xf] }
 0x34a   : > { %v921_v8 = vpop.f32.mrf.mxu0  ;;  %1285 = vmatpush.bf16.msrb.mxu1 %v1801_v6  ;;  %v1927_v6 = vld [vmem:[#allocation4 + $0x18] sm:$0xff] }
 0x34b   : > { %v1919_v8 = vld [vmem:[#allocation2 + $0x54] sm:$0xf0] }
 0x34d   : > { %v1991_v9 = vpop.eup %1990 }
 0x34e   : > { %v1993_v10 = vpop.eup %1992  ;;  %v1060_v11 = vsel %vm754_vm1, %v1991_v9, 0.0 }
 0x34f   : > { %1061 = vadd.xlane.f32.xlu1 %v1060_v11  ;;  %v830_v12 = vsel %vm754_vm1, %v1993_v10, 0.0  ;;  %v1995_v13 = vpop.eup %1994  ;;  %v1790_v11 = vld [vmem:[#allocation2 + $0x58] sm:$0xf0] }
 0x350   : > { %831 = vadd.xlane.f32.xlu2 %v830_v12  ;;  %v963_v15 = vmul.f32 %v1995_v13, %v1987_v45  ;;  %v1780_v13 = vld [vmem:[#allocation2 + $0x40] sm:$0xf] }
 0x355   : > { %v965_v14 = vpop.permute.xlu0 %964 }
 0x356   : > { %985 = vmatpush.msrb.mxu2 %v965_v14  ;;  %v1917_v14 = vld [vmem:[#allocation2 + $0x44] sm:$0xf0] }
 0x357   : > { %1724 = vmatmul.msk.f32.vlgmr.msrb.gmra.mxu2 %vm754_vm1, %v963_v15  ;;  %v1916_v15 = vld [vmem:[#allocation2 + $0x44] sm:$0xf] }
 0x368   : > { %836 = vrot.lane.b32.xlu2 %v2380_v21, %s2093_s23  ;;  %1065 = vrot.lane.b32.xlu1 %v2380_v21, %s2094_s27  ;;  %v1902_v21 = vld [vmem:[%s2489_s4 + $0x10] sm:$0xff] }
 0x3c2   : > { %v1062_v22 = vpop.xlane.xlu1 %1061 }
 0x3c3   : > { %v832_v16 = vpop.xlane.xlu2 %831 }
 0x3c4   : > { %1996 = vrcp.f32 %v832_v16  ;;  %v1781_v16 = vor.u32 %v1917_v14, %v1780_v13 }
 0x3c5   : > { %1998 = vrcp.f32 %v1062_v22  ;;  %v1914_v22 = vld [vmem:[#allocation2 + $0x34] sm:$0xf] }
 0x3c6   : > { %2000 = vrcp.f32 %v2095_v48 }
 0x3ca   : > { %v1997_v17 = vpop.eup %1996 }
 0x3cb   : > { %v834_v19 = vmul.f32 %v1997_v17, %v1993_v10  ;;  %v837_v20 = vpop.permute.xlu2 %836  ;;  %v1999_v23 = vpop.eup %1998  ;;  %v1789_v10 = vor.u32 %v1919_v8, %v1788_v7  ;;  %v1782_v17 = vld [vmem:[#allocation2 + $0x48] sm:$0xf0]  ;;  %v1926_v8 = vld [vmem:[#allocation4 + $0x10] sm:$0xff] }
 0x3cc   : > { %857 = vmatpush.msrb.mxu3 %v837_v20  ;;  %v1064_v24 = vmul.f32 %v1999_v23, %v1991_v9  ;;  %v2001_v55 = vpop.eup %2000  ;;  %v1918_v9 = vld [vmem:[#allocation2 + $0x54] sm:$0xf]  ;;  %v1915_v20 = vld [vmem:[#allocation2 + $0x34] sm:$0xf0]  ;;  %v1933_v7 = vld [vmem:[#allocation4 + $0x48] sm:$0xff] }
 0x3cd   : > { %1703 = vmatmul.msk.f32.vlgmr.msrb.gmra.mxu3 %vm754_vm1, %v834_v19  ;;  %v1136_v56 = vmul.f32 128.0, %v2001_v55  ;;  %vm1140_vm2 = vweird.f32 %v2001_v55  ;;  %v1793_v12 = vor.u32 %v1918_v9, %v1790_v11  ;;  %v1772_v19 = vld [vmem:[#allocation2 + $0x30] sm:$0xf]  ;;  %v1932_v9 = vld [vmem:[#allocation4 + $0x40] sm:$0xff] }
 0x3ce   : > { %888 = vmatpush.bf16.msra.mxu3 %v1903_v18  ;;  %v1785_v18 = vor.u32 %v1916_v15, %v1782_v17  ;;  %v1773_v23 = vor.u32 %v1915_v20, %v1772_v19  ;;  %v1185_v11 = vld [vmem:[%s2494_s9] sm:$0x3] }
 0x3cf   : > { %v1137_v57 = vsub.f32 1.0, %v1136_v56  ;;  %1286 = vmatpush.bf16.msrb.mxu1 %v1793_v12  ;;  %v1980_v56 = vld [vmem:[%s2492_s7] ss:$0 sm:$0xff]  ;;  %v1188_v13 = vperm.slane %v1185_v11, 1  ;;  %v1187_v17 = vperm.slane %v1185_v11, 0 }
 0x3d0   : > { %v1924_v12 = vld [vmem:[#allocation4] sm:$0xff] }
 0x3d1   : > { %v1138_v58 = vmul.f32 %v2001_v55, %v1137_v57 }
 0x3d2   : > { %889 = vmatpush.bf16.msra.mxu3 %v1902_v21  ;;  %v1764_v21 = vld [vmem:[#allocation2 + $0x20] sm:$0xf] }
 0x3d3   : > { %v1139_v59 = vadd.f32 %v2001_v55, %v1138_v58  ;;  %1287 = vmatpush.bf16.msrb.mxu1 %v1785_v18 }
 0x3d5   : > { %v2443_v60 = vsel %vm1140_vm2, %v2001_v55, %v1139_v59 }
 0x3d6   : > { %1016 = vmatpush.bf16.msrb.mxu3 %v1905_v26  ;;  %v1913_v26 = vld [vmem:[#allocation2 + $0x24] sm:$0xf0] }
 0x3d7   : > { %v1765_v28 = vor.u32 %v1913_v26, %v1764_v21 }
 0x3da   : > { %v1066_v25 = vpop.permute.xlu1 %1065  ;;  %1017 = vmatpush.bf16.msrb.mxu3 %v1904_v29  ;;  %v987_v32 = vpop.f32.mrf.mxu2  ;;  %v1766_v29 = vld [vmem:[#allocation2 + $0x28] sm:$0xf0] }
 0x3db   : > { %1086 = vmatpush.msra.mxu2 %v1066_v25  ;;  %v990_v35 = vpack.c.bf16 %v987_v32, %v987_v32  ;;  %v1911_v32 = vld [vmem:[#allocation2 + $0x14] sm:$0xf0] }
 0x3dc   : > { %1736 = vmatmul.msk.f32.vlgmr.msra.gmra.mxu2 %vm754_vm1, %v1064_v24  ;;  %v1774_v24 = vld [vmem:[#allocation2 + $0x38] sm:$0xf0] }
 0x3dd   : > { %v1777_v25 = vor.u32 %v1914_v22, %v1774_v24 }
 0x3df   : > { %1288 = vmatpush.bf16.msrb.mxu1 %v1777_v25 }
 0x450   : > { %v859_v30 = vpop.f32.mrf.mxu3 }
 0x451   : > { %v862_v31 = vpack.c.bf16 %v859_v30, %v859_v30  ;;  %v1769_v30 = vor.u32 %v1912_v27, %v1766_v29 }
 0x453   : > { %1712 = vmatmul.msk.bf16.vlgmr.msra.gmra.mxu3 %vm722_vm0, %v862_v31  ;;  %1289 = vmatpush.bf16.msrb.mxu1 %v1769_v30  ;;  %v1756_v31 = vld [vmem:[#allocation2 + $0x10] sm:$0xf] }
 0x454   : > { %1271 = vmatpush.bf16.msra.mxu3 %v1805_v52 }
 0x458   : > { %1272 = vmatpush.bf16.msra.mxu3 %v1797_v4  ;;  %v1928_v4 = vld [vmem:[#allocation4 + $0x20] sm:$0xff] }
 0x45c   : > { %1273 = vmatpush.bf16.msra.mxu3 %v1789_v10  ;;  %v1925_v10 = vld [vmem:[#allocation4 + $0x8] sm:$0xff] }
 0x45f   : > { %v1088_v33 = vpop.f32.mrf.mxu2 }
 0x460   : > { %v1091_v34 = vpack.c.bf16 %v1088_v33, %v1088_v33  ;;  %1274 = vmatpush.bf16.msra.mxu3 %v1781_v16  ;;  %v1910_v33 = vld [vmem:[#allocation2 + $0x14] sm:$0xf] }
 0x462   : > { %1745 = vmatmul.msk.bf16.vlgmr.msra.gmra.mxu0 %vm722_vm0, %v1091_v34  ;;  %v1757_v34 = vor.u32 %v1911_v32, %v1756_v31 }
 0x463   : > { %1733 = vmatmul.msk.bf16.vlgmr.msrb.gmra.mxu3 %vm722_vm0, %v990_v35  ;;  %v1758_v35 = vld [vmem:[#allocation2 + $0x18] sm:$0xf0] }
 0x464   : > { %1275 = vmatpush.bf16.msra.mxu3 %v1773_v23 }
 0x468   : > { %1276 = vmatpush.bf16.msra.mxu3 %v1765_v28 }
 0x46c   : > { %1277 = vmatpush.bf16.msra.mxu3 %v1757_v34 }
 0x4d6   : > { %v891_v36 = vpop.f32.mrf.mxu3 }
 0x4d7   : > { %v920_v39 = vadd.f32 %v2406_v0, %v891_v36  ;;  %v1761_v36 = vor.u32 %v1910_v33, %v1758_v35 }
 0x4d9   : > { %1290 = vmatpush.bf16.msrb.mxu1 %v1761_v36 }
 0x4de   : > { %v893_v37 = vpop.f32.mrf.mxu3 }
 0x4df   : > { %v1120_v38 = vpop.f32.mrf.mxu0  ;;  %v1748_v37 = vld [vmem:[#allocation2] sm:$0xf] }
 0x4e6   : > { %v1019_v40 = vpop.f32.mrf.mxu3 }
 0x4e7   : > { %v1023_v41 = vadd.f32 %v1019_v40, %v920_v39  ;;  %v1122_v42 = vpop.f32.mrf.mxu0  ;;  %v1908_v39 = vld [vmem:[#allocation2 + $0x4] sm:$0xf] }
 0x4e9   : > { %v1124_v44 = vadd.f32 %v1120_v38, %v1023_v41  ;;  %v1909_v38 = vld [vmem:[#allocation2 + $0x4] sm:$0xf0]  ;;  %v1750_v41 = vld [vmem:[#allocation2 + $0x8] sm:$0xf0] }
 0x4ea   : > { %v1749_v40 = vor.u32 %v1909_v38, %v1748_v37  ;;  %v1753_v42 = vor.u32 %v1908_v39, %v1750_v41 }
 0x4eb   : > { %v1129_v45 = vadd.f32 %v1978_v43, %v1124_v44  ;;  %v1939_v43 = vld [vmem:[#allocation4 + $0x78] sm:$0xff] }
 0x4ec   : > { %1278 = vmatpush.bf16.msra.mxu3 %v1749_v40  ;;  %1291 = vmatpush.bf16.msrb.mxu1 %v1753_v42 }
 0x4ed   : > { %v1130_v46 = vadd.f32 %v1129_v45, %v2344_v62  ;;  %1462 = vmatpush.bf16.msrb.mxu0 %v1939_v43  ;;  %v1981_v43 = vld [vmem:[%s2496_s11] ss:$0 sm:$0xff] }
 0x4ee   : > { %v1021_v47 = vpop.f32.mrf.mxu3 }
 0x4ef   : > { %1133 = vadd.xlane.f32.xlu2 %v1130_v46 }
 0x562   : > { %v1134_v62 = vpop.xlane.xlu2 %1133 }
 0x563   : > { %v1142_v61 = vmul.f32 %v2443_v60, %v1134_v62  ;;  %v1938_v62 = vld [vmem:[#allocation4 + $0x70] sm:$0xff] }
 0x564   : > { %1463 = vmatpush.bf16.msrb.mxu0 %v1938_v62 }
 0x565   : > { %v2446_v63 = vsub.f32 %v1130_v46, %v1142_v61  ;;  %v1931_v61 = vld [vmem:[#allocation4 + $0x38] sm:$0xff] }
 0x566   : > { %1449 = vmatpush.bf16.msrb.mxu2 %v1931_v61 }
 0x567   : > { %v1144_v0 = vmul.f32 %v2446_v63, %v2446_v63 }
 0x569   : > { %1145 = vadd.xlane.f32.xlu0 %v1144_v0  ;;  %v1937_v0 = vld [vmem:[#allocation4 + $0x68] sm:$0xff] }
 0x56a   : > { %1464 = vmatpush.bf16.msrb.mxu0 %v1937_v0  ;;  %1450 = vmatpush.bf16.msrb.mxu2 %v1930_v1  ;;  %v1982_v0 = vld [vmem:[%s2497_s12] ss:$0 sm:$0xff] }
 0x56e   : > { %1451 = vmatpush.bf16.msrb.mxu2 %v1929_v2 }
 0x572   : > { %1452 = vmatpush.bf16.msrb.mxu2 %v1928_v4 }
 0x576   : > { %1453 = vmatpush.bf16.msrb.mxu2 %v1927_v6 }
 0x57a   : > { %1454 = vmatpush.bf16.msrb.mxu2 %v1926_v8 }
 0x57e   : > { %1455 = vmatpush.bf16.msrb.mxu2 %v1925_v10 }
 0x582   : > { %1456 = vmatpush.bf16.msrb.mxu2 %v1924_v12 }
 0x5dc   : > { %v1146_v44 = vpop.xlane.xlu0 %1145 }
 0x5dd   : > { %v1147_v45 = vmul.f32 %v1146_v44, %v2443_v60 }
 0x5df   : > { %v1148_v46 = vadd.f32 1e-05, %v1147_v45 }
 0x5e1   : > { %2002 = vrsqrt.f32 %v1148_v46  ;;  %vm1155_vm4 = vweird.f32 %v1148_v46 }
 0x5e7   : > { %v2003_v47 = vpop.eup %2002 }
 0x5e8   : > { %v1150_v48 = vmul.f32 %v2003_v47, %v1148_v46  ;;  %vm1156_vm3 = vweird.f32 %v2003_v47 }
 0x5e9   : > { %vm1157_vm5 = vmor %vm1155_vm4, %vm1156_vm3 }
 0x5ea   : > { %v1151_v49 = vmul.f32 %v2003_v47, %v1150_v48 }
 0x5ec   : > { %v1152_v50 = vmul.f32 0.5, %v1151_v49 }
 0x5ee   : > { %v1153_v51 = vsub.f32 1.5, %v1152_v50 }
 0x5f0   : > { %v1154_v52 = vmul.f32 %v2003_v47, %v1153_v51 }
 0x5f2   : > { %v1158_v54 = vsel %vm1157_vm5, %v2003_v47, %v1154_v52 }
 0x5f3   : > { %v1159_v55 = vmul.f32 %v1158_v54, %v2446_v63  ;;  %v1936_v63 = vld [vmem:[#allocation4 + $0x60] sm:$0xff] }
 0x5f4   : > { %1465 = vmatpush.bf16.msrb.mxu0 %v1936_v63 }
 0x5f5   : > { %v1163_v57 = vmul.f32 %v1979_v53, %v1159_v55 }
 0x5f7   : > { %v2458_v58 = vadd.f32 %v1980_v56, %v1163_v57 }
 0x5f8   : > { %1466 = vmatpush.bf16.msrb.mxu0 %v1935_v3 }
 0x5f9   : > { %v1168_v59 = vpack.c.bf16 %v2458_v58, %v2458_v58 }
 0x5fb   : > { %1279 = vmatmul.bf16.vlgmr.msra.gmra.mxu3 %v1168_v59  ;;  %1292 = vmatmul.bf16.vlgmr.msrb.gmra.mxu1 %v1168_v59 }
 0x5fc   : > { %1467 = vmatpush.bf16.msrb.mxu0 %v1934_v5 }
 0x600   : > { %1468 = vmatpush.bf16.msrb.mxu0 %v1933_v7 }
 0x604   : > { %1469 = vmatpush.bf16.msrb.mxu0 %v1932_v9 }
 0x678   : > { %v1293_v14 = vpop.f32.mrf.mxu1 }
 0x679   : > { %v1294_v15 = vadd.f32 %v1293_v14, %v1188_v13 }
 0x67b   : > { %v1298_v16 = vmul.f32 %v1294_v15, %v1294_v15 }
 0x67d   : > { %v1300_v18 = vmul.f32 %v1298_v16, %v1294_v15 }
 0x67e   : > { %v1280_v19 = vpop.f32.mrf.mxu3 }
 0x67f   : > { %v1302_v20 = vmul.f32 0.044715, %v1300_v18  ;;  %v1281_v22 = vadd.f32 %v1280_v19, %v1187_v17 }
 0x680   : > { %v1295_v23 = vpop.f32.mrf.mxu1 }
 0x681   : > { %v1304_v24 = vadd.f32 %v1302_v20, %v1294_v15  ;;  %v1297_v25 = vmul.f32 %v1281_v22, %v1281_v22 }
 0x683   : > { %v1306_v21 = vmul.f32 0.7978846, %v1304_v24  ;;  %v1299_v26 = vmul.f32 %v1297_v25, %v1281_v22 }
 0x685   : > { %2004 = vtanh.f32 %v1306_v21  ;;  %v1301_v27 = vmul.f32 0.044715, %v1299_v26 }
 0x686   : > { %v1282_v28 = vpop.f32.mrf.mxu3 }
 0x687   : > { %v1303_v29 = vadd.f32 %v1301_v27, %v1281_v22 }
 0x689   : > { %v1305_v30 = vmul.f32 0.7978846, %v1303_v29 }
 0x68b   : > { %v2005_v31 = vpop.eup %2004  ;;  %2006 = vtanh.f32 %v1305_v30 }
 0x68c   : > { %v1310_v32 = vadd.f32 1.0, %v2005_v31 }
 0x68e   : > { %v1312_v33 = vmul.f32 0.5, %v1310_v32 }
 0x690   : > { %v1314_v34 = vmul.f32 %v1312_v33, %v1294_v15 }
 0x691   : > { %v2007_v35 = vpop.eup %2006 }
 0x692   : > { %v1316_v36 = vpack.c.bf16 %v1314_v34, %v1314_v34  ;;  %v1309_v37 = vadd.f32 1.0, %v2007_v35 }
 0x694   : > { %1470 = vmatmul.bf16.vlgmr.msrb.gmra.mxu0 %v1316_v36  ;;  %v1311_v38 = vmul.f32 0.5, %v1309_v37 }
 0x696   : > { %v1313_v39 = vmul.f32 %v1311_v38, %v1281_v22 }
 0x698   : > { %v1315_v40 = vpack.c.bf16 %v1313_v39, %v1313_v39 }
 0x69a   : > { %1457 = vmatmul.bf16.vlgmr.msrb.gmra.mxu2 %v1315_v40 }
 0x711   : > { %v1471_v41 = vpop.f32.mrf.mxu0 }
 0x719   : > { %v1473_v42 = vpop.f32.mrf.mxu0 }
 0x71d   : > { %v1458_v44 = vpop.f32.mrf.mxu2 }
 0x71e   : > { %v1459_v45 = vadd.f32 %v1981_v43, %v1458_v44 }
 0x720   : > { %v1472_v46 = vadd.f32 %v1471_v41, %v1459_v45 }
 0x722   : > { %v1475_v47 = vadd.f32 %v1472_v46, %v2458_v58 }
 0x724   : > { %1478 = vadd.xlane.f32.xlu1 %v1475_v47 }
 0x725   : > { %v1460_v48 = vpop.f32.mrf.mxu2 }
 0x797   : > { %v1479_v49 = vpop.xlane.xlu1 %1478 }
 0x798   : > { %v1480_v50 = vmul.f32 %v1479_v49, %v2443_v60 }
 0x79a   : > { %v1481_v51 = vsub.f32 %v1475_v47, %v1480_v50 }
 0x79c   : > { %v1482_v52 = vmul.f32 %v1481_v51, %v1481_v51 }
 0x79e   : > { %1483 = vadd.xlane.f32.xlu2 %v1482_v52 }
 0x811   : > { %v1484_v53 = vpop.xlane.xlu2 %1483 }
 0x812   : > { %v1485_v54 = vmul.f32 %v1484_v53, %v2443_v60  ;;  %v1983_v60 = vld [vmem:[%s2498_s13] ss:$0 sm:$0xff] }
 0x814   : > { %v1486_v55 = vadd.f32 1e-05, %v1485_v54 }
 0x816   : > { %2008 = vrsqrt.f32 %v1486_v55  ;;  %vm1493_vm7 = vweird.f32 %v1486_v55 }
 0x81c   : > { %v2009_v56 = vpop.eup %2008 }
 0x81d   : > { %v1488_v57 = vmul.f32 %v2009_v56, %v1486_v55  ;;  %vm1494_vm6 = vweird.f32 %v2009_v56 }
 0x81e   : > { %vm1495_vm8 = vmor %vm1493_vm7, %vm1494_vm6 }
 0x81f   : > { %v1489_v59 = vmul.f32 %v2009_v56, %v1488_v57 }
 0x821   : > { %v1490_v62 = vmul.f32 0.5, %v1489_v59 }
 0x823   : > { %v1491_v61 = vsub.f32 1.5, %v1490_v62 }
 0x825   : > { %v1492_v58 = vmul.f32 %v2009_v56, %v1491_v61 }
 0x827   : > { %v1496_v1 = vsel %vm1495_vm8, %v2009_v56, %v1492_v58 }
 0x828   : > { %v1497_v63 = vmul.f32 %v1496_v1, %v1481_v51 }
 0x82a   : > { %v1501_v2 = vmul.f32 %v1982_v0, %v1497_v63 }
 0x82c   : > { %v1505_v3 = vadd.f32 %v1983_v60, %v1501_v2 }
 0x82e   : > { %1506 = vst [vmem:[%s510_s21] sm:$0xff] %v1505_v3 }
 0x82f PF: > { %s26_s29 = sadd.s32 1, %s2084_s29  }
 0x830   : > { %p23_p7 = scmp.ge.s32.totalorder %s26_s29, 4  }
 0x832   :  { %25 = sbr.rel (!%p23_p7) target bundleno = 2 (0x2), region = 118 }
 0x837   :  { %1526 = vsyncpa [#allocation3], 1 }
 0x838   :  { %1528 = vsyncpa [#allocation3 + $0x1], 1 }
 0x839   :  { %1529 = vsyncpa [#allocation5], 1 }

</bundles_post_ra>
